<compile_context>
chip_gen: v7x
topology: tpu7x:2x2x1
jax: 0.10.0
libtpu: 0.0.40
codegen_flags: <defaults>
</compile_context>

<pallas_src>
import math

import jax
import jax.numpy as jnp
from jax import lax
from jax.experimental import pallas as pl
from jax.experimental.pallas import tpu as pltpu

PAD = 0  # Constants.PAD


def _layer_norm(x, w, b, eps=1e-6):
    mu = jnp.mean(x, axis=-1, keepdims=True)
    var = jnp.mean((x - mu) ** 2, axis=-1, keepdims=True)
    return (x - mu) * lax.rsqrt(var + eps) * w + b


def _gelu(x):
    # TODO(synk): THP uses exact (erf) GELU; tanh approximation kept for guaranteed
    # Mosaic lowering (numerically very close at these magnitudes).
    c = math.sqrt(2.0 / math.pi)
    return 0.5 * x * (1.0 + jnp.tanh(c * (x + 0.044715 * x * x * x)))


def encoder_kernel(etype_ref, etime_ref, npm_ref, keypad_ref,
                   invpos_ref, phase_ref, emb_ref,
                   wq_ref, wk_ref, wv_ref, fcw_ref, fcb_ref, ln1w_ref, ln1b_ref,
                   w1_ref, b1_ref, w2_ref, b2_ref, ln2w_ref, ln2b_ref,
                   out_ref):
    # Per grid step: one batch element, all layers.
    S = etype_ref.shape[1]
    V, D = emb_ref.shape
    L, H, _, d_k = wq_ref.shape

    etype = etype_ref[0]                    # (S, 1) int32
    etime = etime_ref[0]                    # (S, 1) f32
    npm = npm_ref[0]                        # (S, 1) f32  (non-pad mask)
    keypad = keypad_ref[0] > 0.5            # (1, S) bool (True where key is PAD)

    # ---- temporal encoding: sin(time * (1/pos_vec) + phase), phase = pi/2 on odd
    #      dims turns sin into cos; multiplied by non_pad_mask (as in THP). ----
    tem = jnp.sin(etime * invpos_ref[...] + phase_ref[...]) * npm        # (S, D)

    # ---- event embedding via one one-hot matmul (emb PAD row is zero => padding_idx) ----
    vocab_iota = lax.broadcasted_iota(jnp.int32, (S, V), 1)
    onehot = (etype == vocab_iota).astype(jnp.float32)                   # (S, V)
    enc0 = jnp.dot(onehot, emb_ref[...], preferred_element_type=jnp.float32)  # (S, D)

    # ---- attention mask: causal (k > q) OR key padding.  Fully-padded query rows
    #      end up with a uniform softmax; this is harmless ONLY because every layer
    #      output is multiplied by non_pad_mask below — do not drop that multiply. ----
    q_iota = lax.broadcasted_iota(jnp.int32, (S, S), 0)
    k_iota = lax.broadcasted_iota(jnp.int32, (S, S), 1)
    mask = jnp.logical_or(k_iota > q_iota, keypad)                       # (S, S) bool
    mask_h = jnp.broadcast_to(mask[None, :, :], (H, S, S))               # hoisted broadcast

    inv_temp = 1.0 / math.sqrt(d_k)
    neg_inf = jnp.float32(-1e9)

    def layer_body(l, enc):
        # enc_output += tem_enc at the top of every layer: intentional THP parity.
        x = enc + tem                                                    # (S, D)
        residual = x

        # --- multi-head self attention, heads on a leading batch axis ---
        xh = jnp.broadcast_to(x[None, :, :], (H, S, D))                  # (H, S, D)
        q = jnp.einsum('hsd,hde->hse', xh, wq_ref[l],
                       preferred_element_type=jnp.float32)               # (H, S, dk)
        k = jnp.einsum('hsd,hde->hse', xh, wk_ref[l],
                       preferred_element_type=jnp.float32)               # (H, S, dk)
        v = jnp.einsum('hsd,hde->hse', xh, wv_ref[l],
                       preferred_element_type=jnp.float32)               # (H, S, dv)

        scores = jnp.einsum('hqe,hke->hqk', q, k,
                            preferred_element_type=jnp.float32) * inv_temp   # (H, S, S)
        scores = jnp.where(mask_h, neg_inf, scores)
        scores = scores - jnp.max(scores, axis=-1, keepdims=True)
        p = jnp.exp(scores)
        p = p * pl.reciprocal(jnp.sum(p, axis=-1, keepdims=True), approx=True)
        ctx = jnp.einsum('hqk,hke->hqe', p, v,
                         preferred_element_type=jnp.float32)             # (H, S, dv)

        # output projection: concat(heads) @ fcw == sum_h head_h @ fcw_h
        oh = jnp.einsum('hqe,hed->hqd', ctx, fcw_ref[l],
                        preferred_element_type=jnp.float32)              # (H, S, D)
        o = jnp.sum(oh, axis=0) + fcb_ref[l]                             # (S, D)
        o = o + residual
        o = _layer_norm(o, ln1w_ref[l], ln1b_ref[l])
        o = o * npm                                                      # * non_pad_mask

        # --- position-wise feed forward (post-norm, dropout = identity/eval) ---
        res2 = o
        h1 = _gelu(jnp.dot(o, w1_ref[l], preferred_element_type=jnp.float32) + b1_ref[l])
        h2 = jnp.dot(h1, w2_ref[l], preferred_element_type=jnp.float32) + b2_ref[l]
        h2 = h2 + res2
        h2 = _layer_norm(h2, ln2w_ref[l], ln2b_ref[l])
        h2 = h2 * npm                                                    # * non_pad_mask
        return h2

    out_ref[0] = lax.fori_loop(0, L, layer_body, enc0)


def encoder_forward(event_type, event_time, non_pad_mask, params, *,
                    n_layers, n_head, d_k, d_v):
    B, S = event_type.shape
    V, D = params["emb"].shape
    d_inner = params["w1"].shape[-1]
    L, H = n_layers, n_head

    # ---- host-side layout massaging only (no compute hoisted out of the kernel) ----
    etype = event_type.astype(jnp.int32)[:, :, None]                     # (B, S, 1)
    etime = event_time.astype(jnp.float32)[:, :, None]                   # (B, S, 1)
    npm = non_pad_mask.astype(jnp.float32)                               # (B, S, 1)
    key_pad = (event_type == PAD).astype(jnp.float32)[:, None, :]        # (B, 1, S)

    inv_pos = (1.0 / params["pos_vec"]).astype(jnp.float32)              # (1, D)
    phase = ((jnp.arange(D, dtype=jnp.int32) % 2).astype(jnp.float32)
             * jnp.float32(math.pi / 2.0))[None, :]                      # (1, D)

    # split heads on the weights so the kernel never slices the lane axis
    wq = params["wq"].reshape(L, D, H, d_k).transpose(0, 2, 1, 3)        # (L, H, D, dk)
    wk = params["wk"].reshape(L, D, H, d_k).transpose(0, 2, 1, 3)        # (L, H, D, dk)
    wv = params["wv"].reshape(L, D, H, d_v).transpose(0, 2, 1, 3)        # (L, H, D, dv)
    fcw = params["fcw"].reshape(L, H, d_v, D)                            # (L, H, dv, D)
    fcb = params["fcb"].reshape(L, 1, D)
    ln1w = params["ln1w"].reshape(L, 1, D)
    ln1b = params["ln1b"].reshape(L, 1, D)
    w1 = params["w1"]                                                    # (L, D, d_inner)
    b1 = params["b1"].reshape(L, 1, d_inner)
    w2 = params["w2"]                                                    # (L, d_inner, D)
    b2 = params["b2"].reshape(L, 1, D)
    ln2w = params["ln2w"].reshape(L, 1, D)
    ln2b = params["ln2b"].reshape(L, 1, D)

    def full_spec(shape):
        zeros = (0,) * len(shape)
        return pl.BlockSpec(shape, lambda b: zeros)

    grid_spec = pltpu.PrefetchScalarGridSpec(
        num_scalar_prefetch=0,
        grid=(B,),
        in_specs=[
            pl.BlockSpec((1, S, 1), lambda b: (b, 0, 0)),   # event type
            pl.BlockSpec((1, S, 1), lambda b: (b, 0, 0)),   # event time
            pl.BlockSpec((1, S, 1), lambda b: (b, 0, 0)),   # non-pad mask
            pl.BlockSpec((1, 1, S), lambda b: (b, 0, 0)),   # key-pad row
            full_spec((1, D)),                              # 1 / pos_vec
            full_spec((1, D)),                              # sin/cos phase
            full_spec((V, D)),                              # embedding table
            full_spec((L, H, D, d_k)),                      # wq
            full_spec((L, H, D, d_k)),                      # wk
            full_spec((L, H, D, d_v)),                      # wv
            full_spec((L, H, d_v, D)),                      # fc weight (per head)
            full_spec((L, 1, D)),                           # fc bias
            full_spec((L, 1, D)), full_spec((L, 1, D)),     # ln1 w/b
            full_spec((L, D, d_inner)), full_spec((L, 1, d_inner)),  # ffn w1/b1
            full_spec((L, d_inner, D)), full_spec((L, 1, D)),        # ffn w2/b2
            full_spec((L, 1, D)), full_spec((L, 1, D)),     # ln2 w/b
        ],
        out_specs=pl.BlockSpec((1, S, D), lambda b: (b, 0, 0)),
    )

    return pl.pallas_call(
        encoder_kernel,
        out_shape=jax.ShapeDtypeStruct((B, S, D), jnp.float32),
        grid_spec=grid_spec,
        compiler_params=pltpu.CompilerParams(
            dimension_semantics=("parallel",)),             # both TCs on v7x
    )(etype, etime, npm, key_pad, inv_pos, phase, params["emb"],
      wq, wk, wv, fcw, fcb, ln1w, ln1b, w1, b1, w2, b2, ln2w, ln2b)


if __name__ == "__main__":
    # Small shapes consistent with the module.
    B, S = 2, 8
    num_types = 5
    num_goals = 3          # present in __init__, unused by forward
    d_model, d_inner = 32, 64
    n_layers, n_head, d_k, d_v = 2, 4, 8, 8

    key = jax.random.PRNGKey(0)
    keys = jax.random.split(key, 3)

    # Inputs: event types (0 = PAD), monotone event times, non-pad mask (B,S,1).
    event_type = jax.random.randint(keys[0], (B, S), 1, num_types + 1).astype(jnp.int32)
    event_type = event_type.at[1, 6:].set(PAD)
    event_time = jnp.cumsum(
        jax.random.uniform(keys[1], (B, S), minval=0.1, maxval=1.0), axis=1
    ).astype(jnp.float32)
    event_time = jnp.where(event_type != PAD, event_time, 0.0)
    non_pad_mask = (event_type != PAD).astype(jnp.float32)[:, :, None]

    # position_vec = 10000^(2*(i//2)/d_model)
    pos_vec = jnp.array(
        [math.pow(10000.0, 2.0 * (i // 2) / d_model) for i in range(d_model)],
        dtype=jnp.float32)[None, :]                                  # (1, D)

    def rnorm(k, shape, scale=0.05):
        return (scale * jax.random.normal(k, shape)).astype(jnp.float32)

    pk = jax.random.split(keys[2], 10)
    emb = rnorm(pk[0], (num_types + 1, d_model))
    emb = emb.at[PAD].set(0.0)                                       # padding_idx=PAD

    params = dict(
        pos_vec=pos_vec,
        emb=emb,
        wq=rnorm(pk[1], (n_layers, d_model, n_head * d_k)),
        wk=rnorm(pk[2], (n_layers, d_model, n_head * d_k)),
        wv=rnorm(pk[3], (n_layers, d_model, n_head * d_v)),
        fcw=rnorm(pk[4], (n_layers, n_head * d_v, d_model)),
        fcb=rnorm(pk[5], (n_layers, d_model)),
        ln1w=jnp.ones((n_layers, d_model), jnp.float32),
        ln1b=jnp.zeros((n_layers, d_model), jnp.float32),
        w1=rnorm(pk[6], (n_layers, d_model, d_inner)),
        b1=rnorm(pk[7], (n_layers, d_inner)),
        w2=rnorm(pk[8], (n_layers, d_inner, d_model)),
        b2=rnorm(pk[9], (n_layers, d_model)),
        ln2w=jnp.ones((n_layers, d_model), jnp.float32),
        ln2b=jnp.zeros((n_layers, d_model), jnp.float32),
    )

    out = encoder_forward(event_type, event_time, non_pad_mask, params,
                          n_layers=n_layers, n_head=n_head, d_k=d_k, d_v=d_v)
    out = jax.block_until_ready(out)
    assert out.shape == (B, S, d_model)
    assert bool(jnp.all(jnp.isfinite(out)))
    # padded positions must be exactly zeroed by the non_pad_mask multiply
    assert bool(jnp.all(out[1, 6:] == 0.0))
    print("KERNEL_OK")
</pallas_src>

<mosaic_0001>
module attributes {stable_mosaic.version = 11 : i64} {
  func.func @encoder_kernel(%arg0: i32, %arg1: memref<1x8x1xi32, #tpu.memory_space<vmem>>, %arg2: memref<1x8x1xf32, #tpu.memory_space<vmem>>, %arg3: memref<1x8x1xf32, #tpu.memory_space<vmem>>, %arg4: memref<1x1x8xf32, #tpu.memory_space<vmem>>, %arg5: memref<1x32xf32, #tpu.memory_space<vmem>>, %arg6: memref<1x32xf32, #tpu.memory_space<vmem>>, %arg7: memref<6x32xf32, #tpu.memory_space<vmem>>, %arg8: memref<2x4x32x8xf32, #tpu.memory_space<vmem>>, %arg9: memref<2x4x32x8xf32, #tpu.memory_space<vmem>>, %arg10: memref<2x4x32x8xf32, #tpu.memory_space<vmem>>, %arg11: memref<2x4x8x32xf32, #tpu.memory_space<vmem>>, %arg12: memref<2x1x32xf32, #tpu.memory_space<vmem>>, %arg13: memref<2x1x32xf32, #tpu.memory_space<vmem>>, %arg14: memref<2x1x32xf32, #tpu.memory_space<vmem>>, %arg15: memref<2x32x64xf32, #tpu.memory_space<vmem>>, %arg16: memref<2x1x64xf32, #tpu.memory_space<vmem>>, %arg17: memref<2x64x32xf32, #tpu.memory_space<vmem>>, %arg18: memref<2x1x32xf32, #tpu.memory_space<vmem>>, %arg19: memref<2x1x32xf32, #tpu.memory_space<vmem>>, %arg20: memref<2x1x32xf32, #tpu.memory_space<vmem>>, %arg21: memref<1x8x32xf32, #tpu.memory_space<vmem>>) attributes {dimension_semantics = [#tpu.dimension_semantics<parallel>], iteration_bounds = array<i64: 2>, scalar_prefetch = 0 : i64, scratch_operands = 0 : i64, tpu.core_type = #tpu.core_type<tc>, window_params = [{transform_indices = @transform_0, window_bounds = array<i64: 1, 8, 1>}, {transform_indices = @transform_1, window_bounds = array<i64: 1, 8, 1>}, {transform_indices = @transform_2, window_bounds = array<i64: 1, 8, 1>}, {transform_indices = @transform_3, window_bounds = array<i64: 1, 1, 8>}, {pipeline_mode = #tpu.pipeline_mode<synchronous>, transform_indices = @transform_4, window_bounds = array<i64: 1, 32>}, {pipeline_mode = #tpu.pipeline_mode<synchronous>, transform_indices = @transform_5, window_bounds = array<i64: 1, 32>}, {pipeline_mode = #tpu.pipeline_mode<synchronous>, transform_indices = @transform_6, window_bounds = array<i64: 6, 32>}, {pipeline_mode = #tpu.pipeline_mode<synchronous>, transform_indices = @transform_7, window_bounds = array<i64: 2, 4, 32, 8>}, {pipeline_mode = #tpu.pipeline_mode<synchronous>, transform_indices = @transform_8, window_bounds = array<i64: 2, 4, 32, 8>}, {pipeline_mode = #tpu.pipeline_mode<synchronous>, transform_indices = @transform_9, window_bounds = array<i64: 2, 4, 32, 8>}, {pipeline_mode = #tpu.pipeline_mode<synchronous>, transform_indices = @transform_10, window_bounds = array<i64: 2, 4, 8, 32>}, {pipeline_mode = #tpu.pipeline_mode<synchronous>, transform_indices = @transform_11, window_bounds = array<i64: 2, 1, 32>}, {pipeline_mode = #tpu.pipeline_mode<synchronous>, transform_indices = @transform_12, window_bounds = array<i64: 2, 1, 32>}, {pipeline_mode = #tpu.pipeline_mode<synchronous>, transform_indices = @transform_13, window_bounds = array<i64: 2, 1, 32>}, {pipeline_mode = #tpu.pipeline_mode<synchronous>, transform_indices = @transform_14, window_bounds = array<i64: 2, 32, 64>}, {pipeline_mode = #tpu.pipeline_mode<synchronous>, transform_indices = @transform_15, window_bounds = array<i64: 2, 1, 64>}, {pipeline_mode = #tpu.pipeline_mode<synchronous>, transform_indices = @transform_16, window_bounds = array<i64: 2, 64, 32>}, {pipeline_mode = #tpu.pipeline_mode<synchronous>, transform_indices = @transform_17, window_bounds = array<i64: 2, 1, 32>}, {pipeline_mode = #tpu.pipeline_mode<synchronous>, transform_indices = @transform_18, window_bounds = array<i64: 2, 1, 32>}, {pipeline_mode = #tpu.pipeline_mode<synchronous>, transform_indices = @transform_19, window_bounds = array<i64: 2, 1, 32>}, {transform_indices = @transform_20, window_bounds = array<i64: 1, 8, 32>}]} {
    %c0 = arith.constant 0 : index
    %c0_0 = arith.constant 0 : index
    %c0_1 = arith.constant 0 : index
    %0 = vector.load %arg1[%c0, %c0_0, %c0_1] : memref<1x8x1xi32, #tpu.memory_space<vmem>>, vector<1x8x1xi32>
    %1 = vector.shape_cast %0 : vector<1x8x1xi32> to vector<8x1xi32>
    %c0_2 = arith.constant 0 : index
    %c0_3 = arith.constant 0 : index
    %c0_4 = arith.constant 0 : index
    %2 = vector.load %arg2[%c0_2, %c0_3, %c0_4] : memref<1x8x1xf32, #tpu.memory_space<vmem>>, vector<1x8x1xf32>
    %3 = vector.shape_cast %2 : vector<1x8x1xf32> to vector<8x1xf32>
    %c0_5 = arith.constant 0 : index
    %c0_6 = arith.constant 0 : index
    %c0_7 = arith.constant 0 : index
    %4 = vector.load %arg3[%c0_5, %c0_6, %c0_7] : memref<1x8x1xf32, #tpu.memory_space<vmem>>, vector<1x8x1xf32>
    %5 = vector.shape_cast %4 : vector<1x8x1xf32> to vector<8x1xf32>
    %c0_8 = arith.constant 0 : index
    %c0_9 = arith.constant 0 : index
    %c0_10 = arith.constant 0 : index
    %6 = vector.load %arg4[%c0_8, %c0_9, %c0_10] : memref<1x1x8xf32, #tpu.memory_space<vmem>>, vector<1x1x8xf32>
    %7 = vector.shape_cast %6 : vector<1x1x8xf32> to vector<1x8xf32>
    %cst = arith.constant 5.000000e-01 : f32
    %8 = vector.broadcast %cst : f32 to vector<1x8xf32>
    %9 = arith.cmpf ogt, %7, %8 : vector<1x8xf32>
    %c0_11 = arith.constant 0 : index
    %c0_12 = arith.constant 0 : index
    %10 = vector.load %arg5[%c0_11, %c0_12] : memref<1x32xf32, #tpu.memory_space<vmem>>, vector<1x32xf32>
    %11 = vector.broadcast %3 : vector<8x1xf32> to vector<8x32xf32>
    %12 = vector.broadcast %10 : vector<1x32xf32> to vector<8x32xf32>
    %13 = arith.mulf %11, %12 : vector<8x32xf32>
    %c0_13 = arith.constant 0 : index
    %c0_14 = arith.constant 0 : index
    %14 = vector.load %arg6[%c0_13, %c0_14] : memref<1x32xf32, #tpu.memory_space<vmem>>, vector<1x32xf32>
    %15 = vector.broadcast %14 : vector<1x32xf32> to vector<8x32xf32>
    %16 = arith.addf %13, %15 : vector<8x32xf32>
    %17 = math.sin %16 : vector<8x32xf32>
    %18 = vector.broadcast %5 : vector<8x1xf32> to vector<8x32xf32>
    %19 = arith.mulf %17, %18 : vector<8x32xf32>
    %20 = tpu.iota {dimensions = array<i32: 1>} : vector<8x6xi32>
    %21 = vector.broadcast %1 : vector<8x1xi32> to vector<8x6xi32>
    %22 = arith.cmpi eq, %21, %20 : vector<8x6xi32>
    %23 = arith.extui %22 : vector<8x6xi1> to vector<8x6xi32>
    %24 = arith.sitofp %23 : vector<8x6xi32> to vector<8x6xf32>
    %c0_15 = arith.constant 0 : index
    %c0_16 = arith.constant 0 : index
    %25 = vector.load %arg7[%c0_15, %c0_16] : memref<6x32xf32, #tpu.memory_space<vmem>>, vector<6x32xf32>
    %cst_17 = arith.constant dense<0.000000e+00> : vector<8x32xf32>
    %26 = tpu.matmul %24, %25, %cst_17 {dimension_numbers = #tpu.dot_dimension_numbers<[1], [0], [0], [1], [0, 0, 1, 1], [], []>} : vector<8x6xf32>, vector<6x32xf32>, vector<8x32xf32> -> vector<8x32xf32>
    %27 = tpu.iota {dimensions = array<i32: 0>} : vector<8x8xi32>
    %28 = tpu.iota {dimensions = array<i32: 1>} : vector<8x8xi32>
    %29 = arith.cmpi sgt, %28, %27 : vector<8x8xi32>
    %30 = vector.broadcast %9 : vector<1x8xi1> to vector<8x8xi1>
    %31 = arith.ori %29, %30 : vector<8x8xi1>
    %32 = vector.shape_cast %31 : vector<8x8xi1> to vector<1x8x8xi1>
    %33 = vector.shape_cast %32 : vector<1x8x8xi1> to vector<1x8x8xi1>
    %34 = vector.broadcast %33 : vector<1x8x8xi1> to vector<4x8x8xi1>
    %cst_18 = arith.constant -1.000000e+09 : f32
    %c0_i32 = arith.constant 0 : i32
    %c2_i32 = arith.constant 2 : i32
    %35 = arith.addi %c0_i32, %c2_i32 : i32
    %c1_i32 = arith.constant 1 : i32
    %36 = scf.for %arg22 = %c0_i32 to %35 step %c1_i32 iter_args(%arg23 = %26) -> (vector<8x32xf32>)  : i32 {
      %40 = arith.addf %arg23, %19 : vector<8x32xf32>
      %41 = vector.shape_cast %40 : vector<8x32xf32> to vector<1x8x32xf32>
      %42 = vector.shape_cast %41 : vector<1x8x32xf32> to vector<1x8x32xf32>
      %43 = vector.broadcast %42 : vector<1x8x32xf32> to vector<4x8x32xf32>
      %44 = arith.index_cast %arg22 : i32 to index
      %c0_23 = arith.constant 0 : index
      %c0_24 = arith.constant 0 : index
      %c0_25 = arith.constant 0 : index
      %45 = vector.load %arg8[%44, %c0_23, %c0_24, %c0_25] : memref<2x4x32x8xf32, #tpu.memory_space<vmem>>, vector<1x4x32x8xf32>
      %46 = vector.shape_cast %45 : vector<1x4x32x8xf32> to vector<4x32x8xf32>
      "tpu.trace_start"() <{level = 10 : i32, message = "hsd,hde->hse"}> : () -> ()
      %cst_26 = arith.constant dense<0.000000e+00> : vector<4x8x8xf32>
      %47 = tpu.matmul %43, %46, %cst_26 {dimension_numbers = #tpu.dot_dimension_numbers<[2], [1], [1], [2], [0, 0, 0, 1, 1, 2], [0], [0]>} : vector<4x8x32xf32>, vector<4x32x8xf32>, vector<4x8x8xf32> -> vector<4x8x8xf32>
      "tpu.trace_stop"() : () -> ()
      %48 = arith.index_cast %arg22 : i32 to index
      %c0_27 = arith.constant 0 : index
      %c0_28 = arith.constant 0 : index
      %c0_29 = arith.constant 0 : index
      %49 = vector.load %arg9[%48, %c0_27, %c0_28, %c0_29] : memref<2x4x32x8xf32, #tpu.memory_space<vmem>>, vector<1x4x32x8xf32>
      %50 = vector.shape_cast %49 : vector<1x4x32x8xf32> to vector<4x32x8xf32>
      "tpu.trace_start"() <{level = 10 : i32, message = "hsd,hde->hse"}> : () -> ()
      %cst_30 = arith.constant dense<0.000000e+00> : vector<4x8x8xf32>
      %51 = tpu.matmul %43, %50, %cst_30 {dimension_numbers = #tpu.dot_dimension_numbers<[2], [1], [1], [2], [0, 0, 0, 1, 1, 2], [0], [0]>} : vector<4x8x32xf32>, vector<4x32x8xf32>, vector<4x8x8xf32> -> vector<4x8x8xf32>
      "tpu.trace_stop"() : () -> ()
      %52 = arith.index_cast %arg22 : i32 to index
      %c0_31 = arith.constant 0 : index
      %c0_32 = arith.constant 0 : index
      %c0_33 = arith.constant 0 : index
      %53 = vector.load %arg10[%52, %c0_31, %c0_32, %c0_33] : memref<2x4x32x8xf32, #tpu.memory_space<vmem>>, vector<1x4x32x8xf32>
      %54 = vector.shape_cast %53 : vector<1x4x32x8xf32> to vector<4x32x8xf32>
      "tpu.trace_start"() <{level = 10 : i32, message = "hsd,hde->hse"}> : () -> ()
      %cst_34 = arith.constant dense<0.000000e+00> : vector<4x8x8xf32>
      %55 = tpu.matmul %43, %54, %cst_34 {dimension_numbers = #tpu.dot_dimension_numbers<[2], [1], [1], [2], [0, 0, 0, 1, 1, 2], [0], [0]>} : vector<4x8x32xf32>, vector<4x32x8xf32>, vector<4x8x8xf32> -> vector<4x8x8xf32>
      "tpu.trace_stop"() : () -> ()
      "tpu.trace_start"() <{level = 10 : i32, message = "hqe,hke->hqk"}> : () -> ()
      %cst_35 = arith.constant dense<0.000000e+00> : vector<4x8x8xf32>
      %56 = tpu.matmul %47, %51, %cst_35 {dimension_numbers = #tpu.dot_dimension_numbers<[2], [2], [1], [1], [0, 0, 0, 1, 1, 1], [0], [0]>} : vector<4x8x8xf32>, vector<4x8x8xf32>, vector<4x8x8xf32> -> vector<4x8x8xf32>
      "tpu.trace_stop"() : () -> ()
      %cst_36 = arith.constant 0.353553385 : f32
      %57 = vector.broadcast %cst_36 : f32 to vector<4x8x8xf32>
      %58 = arith.mulf %56, %57 : vector<4x8x8xf32>
      %59 = vector.broadcast %cst_18 : f32 to vector<4x8x8xf32>
      %60 = arith.select %34, %59, %58 : vector<4x8x8xi1>, vector<4x8x8xf32>
      %cst_37 = arith.constant dense<0xFF800000> : vector<4x8xf32>
      %61 = vector.multi_reduction <maximumf>, %60, %cst_37 [2] : vector<4x8x8xf32> to vector<4x8xf32>
      %62 = vector.shape_cast %61 : vector<4x8xf32> to vector<4x8x1xf32>
      %63 = vector.broadcast %62 : vector<4x8x1xf32> to vector<4x8x8xf32>
      %64 = arith.subf %60, %63 : vector<4x8x8xf32>
      %65 = math.exp %64 : vector<4x8x8xf32>
      %cst_38 = arith.constant dense<0.000000e+00> : vector<4x8xf32>
      %66 = vector.multi_reduction <add>, %65, %cst_38 [2] : vector<4x8x8xf32> to vector<4x8xf32>
      %67 = vector.shape_cast %66 : vector<4x8xf32> to vector<4x8x1xf32>
      %68 = tpu.reciprocal %67 {approx = true} : vector<4x8x1xf32> -> vector<4x8x1xf32>
      %69 = vector.broadcast %68 : vector<4x8x1xf32> to vector<4x8x8xf32>
      %70 = arith.mulf %65, %69 : vector<4x8x8xf32>
      "tpu.trace_start"() <{level = 10 : i32, message = "hqk,hke->hqe"}> : () -> ()
      %cst_39 = arith.constant dense<0.000000e+00> : vector<4x8x8xf32>
      %71 = tpu.matmul %70, %55, %cst_39 {dimension_numbers = #tpu.dot_dimension_numbers<[2], [1], [1], [2], [0, 0, 0, 1, 1, 2], [0], [0]>} : vector<4x8x8xf32>, vector<4x8x8xf32>, vector<4x8x8xf32> -> vector<4x8x8xf32>
      "tpu.trace_stop"() : () -> ()
      %72 = arith.index_cast %arg22 : i32 to index
      %c0_40 = arith.constant 0 : index
      %c0_41 = arith.constant 0 : index
      %c0_42 = arith.constant 0 : index
      %73 = vector.load %arg11[%72, %c0_40, %c0_41, %c0_42] : memref<2x4x8x32xf32, #tpu.memory_space<vmem>>, vector<1x4x8x32xf32>
      %74 = vector.shape_cast %73 : vector<1x4x8x32xf32> to vector<4x8x32xf32>
      "tpu.trace_start"() <{level = 10 : i32, message = "hqe,hed->hqd"}> : () -> ()
      %cst_43 = arith.constant dense<0.000000e+00> : vector<4x8x32xf32>
      %75 = tpu.matmul %71, %74, %cst_43 {dimension_numbers = #tpu.dot_dimension_numbers<[2], [1], [1], [2], [0, 0, 0, 1, 1, 2], [0], [0]>} : vector<4x8x8xf32>, vector<4x8x32xf32>, vector<4x8x32xf32> -> vector<4x8x32xf32>
      "tpu.trace_stop"() : () -> ()
      %cst_44 = arith.constant dense<0.000000e+00> : vector<8x32xf32>
      %76 = vector.multi_reduction <add>, %75, %cst_44 [0] : vector<4x8x32xf32> to vector<8x32xf32>
      %77 = arith.index_cast %arg22 : i32 to index
      %c0_45 = arith.constant 0 : index
      %c0_46 = arith.constant 0 : index
      %78 = vector.load %arg12[%77, %c0_45, %c0_46] : memref<2x1x32xf32, #tpu.memory_space<vmem>>, vector<1x1x32xf32>
      %79 = vector.shape_cast %78 : vector<1x1x32xf32> to vector<1x32xf32>
      %80 = vector.broadcast %79 : vector<1x32xf32> to vector<8x32xf32>
      %81 = arith.addf %76, %80 : vector<8x32xf32>
      %82 = arith.addf %81, %40 : vector<8x32xf32>
      %83 = arith.index_cast %arg22 : i32 to index
      %c0_47 = arith.constant 0 : index
      %c0_48 = arith.constant 0 : index
      %84 = vector.load %arg13[%83, %c0_47, %c0_48] : memref<2x1x32xf32, #tpu.memory_space<vmem>>, vector<1x1x32xf32>
      %85 = vector.shape_cast %84 : vector<1x1x32xf32> to vector<1x32xf32>
      %86 = arith.index_cast %arg22 : i32 to index
      %c0_49 = arith.constant 0 : index
      %c0_50 = arith.constant 0 : index
      %87 = vector.load %arg14[%86, %c0_49, %c0_50] : memref<2x1x32xf32, #tpu.memory_space<vmem>>, vector<1x1x32xf32>
      %88 = vector.shape_cast %87 : vector<1x1x32xf32> to vector<1x32xf32>
      %cst_51 = arith.constant dense<0.000000e+00> : vector<8xf32>
      %89 = vector.multi_reduction <add>, %82, %cst_51 [1] : vector<8x32xf32> to vector<8xf32>
      %90 = vector.shape_cast %89 : vector<8xf32> to vector<8x1xf32>
      %cst_52 = arith.constant 3.200000e+01 : f32
      %91 = vector.broadcast %cst_52 : f32 to vector<8x1xf32>
      %92 = arith.divf %90, %91 : vector<8x1xf32>
      %93 = vector.broadcast %92 : vector<8x1xf32> to vector<8x32xf32>
      %94 = arith.subf %82, %93 : vector<8x32xf32>
      %95 = arith.mulf %94, %94 : vector<8x32xf32>
      %cst_53 = arith.constant dense<0.000000e+00> : vector<8xf32>
      %96 = vector.multi_reduction <add>, %95, %cst_53 [1] : vector<8x32xf32> to vector<8xf32>
      %97 = vector.shape_cast %96 : vector<8xf32> to vector<8x1xf32>
      %cst_54 = arith.constant 3.200000e+01 : f32
      %98 = vector.broadcast %cst_54 : f32 to vector<8x1xf32>
      %99 = arith.divf %97, %98 : vector<8x1xf32>
      %100 = vector.broadcast %92 : vector<8x1xf32> to vector<8x32xf32>
      %101 = arith.subf %82, %100 : vector<8x32xf32>
      %cst_55 = arith.constant 9.99999997E-7 : f32
      %102 = vector.broadcast %cst_55 : f32 to vector<8x1xf32>
      %103 = arith.addf %99, %102 : vector<8x1xf32>
      %104 = math.rsqrt %103 : vector<8x1xf32>
      %105 = vector.broadcast %104 : vector<8x1xf32> to vector<8x32xf32>
      %106 = arith.mulf %101, %105 : vector<8x32xf32>
      %107 = vector.broadcast %85 : vector<1x32xf32> to vector<8x32xf32>
      %108 = arith.mulf %106, %107 : vector<8x32xf32>
      %109 = vector.broadcast %88 : vector<1x32xf32> to vector<8x32xf32>
      %110 = arith.addf %108, %109 : vector<8x32xf32>
      %111 = vector.broadcast %5 : vector<8x1xf32> to vector<8x32xf32>
      %112 = arith.mulf %110, %111 : vector<8x32xf32>
      %113 = arith.index_cast %arg22 : i32 to index
      %c0_56 = arith.constant 0 : index
      %c0_57 = arith.constant 0 : index
      %114 = vector.load %arg15[%113, %c0_56, %c0_57] : memref<2x32x64xf32, #tpu.memory_space<vmem>>, vector<1x32x64xf32>
      %115 = vector.shape_cast %114 : vector<1x32x64xf32> to vector<32x64xf32>
      %cst_58 = arith.constant dense<0.000000e+00> : vector<8x64xf32>
      %116 = tpu.matmul %112, %115, %cst_58 {dimension_numbers = #tpu.dot_dimension_numbers<[1], [0], [0], [1], [0, 0, 1, 1], [], []>} : vector<8x32xf32>, vector<32x64xf32>, vector<8x64xf32> -> vector<8x64xf32>
      %117 = arith.index_cast %arg22 : i32 to index
      %c0_59 = arith.constant 0 : index
      %c0_60 = arith.constant 0 : index
      %118 = vector.load %arg16[%117, %c0_59, %c0_60] : memref<2x1x64xf32, #tpu.memory_space<vmem>>, vector<1x1x64xf32>
      %119 = vector.shape_cast %118 : vector<1x1x64xf32> to vector<1x64xf32>
      %120 = vector.broadcast %119 : vector<1x64xf32> to vector<8x64xf32>
      %121 = arith.addf %116, %120 : vector<8x64xf32>
      %cst_61 = arith.constant 5.000000e-01 : f32
      %122 = vector.broadcast %cst_61 : f32 to vector<8x64xf32>
      %123 = arith.mulf %122, %121 : vector<8x64xf32>
      %cst_62 = arith.constant 4.471500e-02 : f32
      %124 = vector.broadcast %cst_62 : f32 to vector<8x64xf32>
      %125 = arith.mulf %124, %121 : vector<8x64xf32>
      %126 = arith.mulf %125, %121 : vector<8x64xf32>
      %127 = arith.mulf %126, %121 : vector<8x64xf32>
      %128 = arith.addf %121, %127 : vector<8x64xf32>
      %cst_63 = arith.constant 0.797884583 : f32
      %129 = vector.broadcast %cst_63 : f32 to vector<8x64xf32>
      %130 = arith.mulf %129, %128 : vector<8x64xf32>
      %131 = math.tanh %130 : vector<8x64xf32>
      %cst_64 = arith.constant 1.000000e+00 : f32
      %132 = vector.broadcast %cst_64 : f32 to vector<8x64xf32>
      %133 = arith.addf %132, %131 : vector<8x64xf32>
      %134 = arith.mulf %123, %133 : vector<8x64xf32>
      %135 = arith.index_cast %arg22 : i32 to index
      %c0_65 = arith.constant 0 : index
      %c0_66 = arith.constant 0 : index
      %136 = vector.load %arg17[%135, %c0_65, %c0_66] : memref<2x64x32xf32, #tpu.memory_space<vmem>>, vector<1x64x32xf32>
      %137 = vector.shape_cast %136 : vector<1x64x32xf32> to vector<64x32xf32>
      %cst_67 = arith.constant dense<0.000000e+00> : vector<8x32xf32>
      %138 = tpu.matmul %134, %137, %cst_67 {dimension_numbers = #tpu.dot_dimension_numbers<[1], [0], [0], [1], [0, 0, 1, 1], [], []>} : vector<8x64xf32>, vector<64x32xf32>, vector<8x32xf32> -> vector<8x32xf32>
      %139 = arith.index_cast %arg22 : i32 to index
      %c0_68 = arith.constant 0 : index
      %c0_69 = arith.constant 0 : index
      %140 = vector.load %arg18[%139, %c0_68, %c0_69] : memref<2x1x32xf32, #tpu.memory_space<vmem>>, vector<1x1x32xf32>
      %141 = vector.shape_cast %140 : vector<1x1x32xf32> to vector<1x32xf32>
      %142 = vector.broadcast %141 : vector<1x32xf32> to vector<8x32xf32>
      %143 = arith.addf %138, %142 : vector<8x32xf32>
      %144 = arith.addf %143, %112 : vector<8x32xf32>
      %145 = arith.index_cast %arg22 : i32 to index
      %c0_70 = arith.constant 0 : index
      %c0_71 = arith.constant 0 : index
      %146 = vector.load %arg19[%145, %c0_70, %c0_71] : memref<2x1x32xf32, #tpu.memory_space<vmem>>, vector<1x1x32xf32>
      %147 = vector.shape_cast %146 : vector<1x1x32xf32> to vector<1x32xf32>
      %148 = arith.index_cast %arg22 : i32 to index
      %c0_72 = arith.constant 0 : index
      %c0_73 = arith.constant 0 : index
      %149 = vector.load %arg20[%148, %c0_72, %c0_73] : memref<2x1x32xf32, #tpu.memory_space<vmem>>, vector<1x1x32xf32>
      %150 = vector.shape_cast %149 : vector<1x1x32xf32> to vector<1x32xf32>
      %cst_74 = arith.constant dense<0.000000e+00> : vector<8xf32>
      %151 = vector.multi_reduction <add>, %144, %cst_74 [1] : vector<8x32xf32> to vector<8xf32>
      %152 = vector.shape_cast %151 : vector<8xf32> to vector<8x1xf32>
      %cst_75 = arith.constant 3.200000e+01 : f32
      %153 = vector.broadcast %cst_75 : f32 to vector<8x1xf32>
      %154 = arith.divf %152, %153 : vector<8x1xf32>
      %155 = vector.broadcast %154 : vector<8x1xf32> to vector<8x32xf32>
      %156 = arith.subf %144, %155 : vector<8x32xf32>
      %157 = arith.mulf %156, %156 : vector<8x32xf32>
      %cst_76 = arith.constant dense<0.000000e+00> : vector<8xf32>
      %158 = vector.multi_reduction <add>, %157, %cst_76 [1] : vector<8x32xf32> to vector<8xf32>
      %159 = vector.shape_cast %158 : vector<8xf32> to vector<8x1xf32>
      %cst_77 = arith.constant 3.200000e+01 : f32
      %160 = vector.broadcast %cst_77 : f32 to vector<8x1xf32>
      %161 = arith.divf %159, %160 : vector<8x1xf32>
      %162 = vector.broadcast %154 : vector<8x1xf32> to vector<8x32xf32>
      %163 = arith.subf %144, %162 : vector<8x32xf32>
      %cst_78 = arith.constant 9.99999997E-7 : f32
      %164 = vector.broadcast %cst_78 : f32 to vector<8x1xf32>
      %165 = arith.addf %161, %164 : vector<8x1xf32>
      %166 = math.rsqrt %165 : vector<8x1xf32>
      %167 = vector.broadcast %166 : vector<8x1xf32> to vector<8x32xf32>
      %168 = arith.mulf %163, %167 : vector<8x32xf32>
      %169 = vector.broadcast %147 : vector<1x32xf32> to vector<8x32xf32>
      %170 = arith.mulf %168, %169 : vector<8x32xf32>
      %171 = vector.broadcast %150 : vector<1x32xf32> to vector<8x32xf32>
      %172 = arith.addf %170, %171 : vector<8x32xf32>
      %173 = vector.broadcast %5 : vector<8x1xf32> to vector<8x32xf32>
      %174 = arith.mulf %172, %173 : vector<8x32xf32>
      scf.yield %174 : vector<8x32xf32>
    }
    %c2_i32_19 = arith.constant 2 : i32
    %c0_20 = arith.constant 0 : index
    %c0_21 = arith.constant 0 : index
    %c0_22 = arith.constant 0 : index
    %37 = vector.load %arg21[%c0_20, %c0_21, %c0_22] : memref<1x8x32xf32, #tpu.memory_space<vmem>>, vector<1x8x32xf32>
    %38 = vector.shape_cast %37 : vector<1x8x32xf32> to vector<8x32xf32>
    %39 = vector.shape_cast %36 : vector<8x32xf32> to vector<1x8x32xf32>
    tpu.vector_store %arg21[%c0_20, %c0_21, %c0_22], %39 {strides = array<i32>} : memref<1x8x32xf32, #tpu.memory_space<vmem>>, vector<1x8x32xf32>,
    return
  }
  func.func @transform_0(%arg0: i32) -> (i32, i32, i32) {
    %c0_i32 = arith.constant 0 : i32
    %c0_i32_0 = arith.constant 0 : i32
    %c0_i32_1 = arith.constant 0 : i32
    return %arg0, %c0_i32, %c0_i32_0 : i32, i32, i32
  }
  func.func @transform_1(%arg0: i32) -> (i32, i32, i32) {
    %c0_i32 = arith.constant 0 : i32
    %c0_i32_0 = arith.constant 0 : i32
    %c0_i32_1 = arith.constant 0 : i32
    return %arg0, %c0_i32, %c0_i32_0 : i32, i32, i32
  }
  func.func @transform_2(%arg0: i32) -> (i32, i32, i32) {
    %c0_i32 = arith.constant 0 : i32
    %c0_i32_0 = arith.constant 0 : i32
    %c0_i32_1 = arith.constant 0 : i32
    return %arg0, %c0_i32, %c0_i32_0 : i32, i32, i32
  }
  func.func @transform_3(%arg0: i32) -> (i32, i32, i32) {
    %c0_i32 = arith.constant 0 : i32
    %c0_i32_0 = arith.constant 0 : i32
    %c0_i32_1 = arith.constant 0 : i32
    return %arg0, %c0_i32, %c0_i32_0 : i32, i32, i32
  }
  func.func @transform_4(%arg0: i32) -> (i32, i32) {
    %c0_i32 = arith.constant 0 : i32
    %c0_i32_0 = arith.constant 0 : i32
    %c0_i32_1 = arith.constant 0 : i32
    return %c0_i32, %c0_i32_0 : i32, i32
  }
  func.func @transform_5(%arg0: i32) -> (i32, i32) {
    %c0_i32 = arith.constant 0 : i32
    %c0_i32_0 = arith.constant 0 : i32
    %c0_i32_1 = arith.constant 0 : i32
    return %c0_i32, %c0_i32_0 : i32, i32
  }
  func.func @transform_6(%arg0: i32) -> (i32, i32) {
    %c0_i32 = arith.constant 0 : i32
    %c0_i32_0 = arith.constant 0 : i32
    %c0_i32_1 = arith.constant 0 : i32
    return %c0_i32, %c0_i32_0 : i32, i32
  }
  func.func @transform_7(%arg0: i32) -> (i32, i32, i32, i32) {
    %c0_i32 = arith.constant 0 : i32
    %c0_i32_0 = arith.constant 0 : i32
    %c0_i32_1 = arith.constant 0 : i32
    %c0_i32_2 = arith.constant 0 : i32
    %c0_i32_3 = arith.constant 0 : i32
    return %c0_i32, %c0_i32_0, %c0_i32_1, %c0_i32_2 : i32, i32, i32, i32
  }
  func.func @transform_8(%arg0: i32) -> (i32, i32, i32, i32) {
    %c0_i32 = arith.constant 0 : i32
    %c0_i32_0 = arith.constant 0 : i32
    %c0_i32_1 = arith.constant 0 : i32
    %c0_i32_2 = arith.constant 0 : i32
    %c0_i32_3 = arith.constant 0 : i32
    return %c0_i32, %c0_i32_0, %c0_i32_1, %c0_i32_2 : i32, i32, i32, i32
  }
  func.func @transform_9(%arg0: i32) -> (i32, i32, i32, i32) {
    %c0_i32 = arith.constant 0 : i32
    %c0_i32_0 = arith.constant 0 : i32
    %c0_i32_1 = arith.constant 0 : i32
    %c0_i32_2 = arith.constant 0 : i32
    %c0_i32_3 = arith.constant 0 : i32
    return %c0_i32, %c0_i32_0, %c0_i32_1, %c0_i32_2 : i32, i32, i32, i32
  }
  func.func @transform_10(%arg0: i32) -> (i32, i32, i32, i32) {
    %c0_i32 = arith.constant 0 : i32
    %c0_i32_0 = arith.constant 0 : i32
    %c0_i32_1 = arith.constant 0 : i32
    %c0_i32_2 = arith.constant 0 : i32
    %c0_i32_3 = arith.constant 0 : i32
    return %c0_i32, %c0_i32_0, %c0_i32_1, %c0_i32_2 : i32, i32, i32, i32
  }
  func.func @transform_11(%arg0: i32) -> (i32, i32, i32) {
    %c0_i32 = arith.constant 0 : i32
    %c0_i32_0 = arith.constant 0 : i32
    %c0_i32_1 = arith.constant 0 : i32
    %c0_i32_2 = arith.constant 0 : i32
    return %c0_i32, %c0_i32_0, %c0_i32_1 : i32, i32, i32
  }
  func.func @transform_12(%arg0: i32) -> (i32, i32, i32) {
    %c0_i32 = arith.constant 0 : i32
    %c0_i32_0 = arith.constant 0 : i32
    %c0_i32_1 = arith.constant 0 : i32
    %c0_i32_2 = arith.constant 0 : i32
    return %c0_i32, %c0_i32_0, %c0_i32_1 : i32, i32, i32
  }
  func.func @transform_13(%arg0: i32) -> (i32, i32, i32) {
    %c0_i32 = arith.constant 0 : i32
    %c0_i32_0 = arith.constant 0 : i32
    %c0_i32_1 = arith.constant 0 : i32
    %c0_i32_2 = arith.constant 0 : i32
    return %c0_i32, %c0_i32_0, %c0_i32_1 : i32, i32, i32
  }
  func.func @transform_14(%arg0: i32) -> (i32, i32, i32) {
    %c0_i32 = arith.constant 0 : i32
    %c0_i32_0 = arith.constant 0 : i32
    %c0_i32_1 = arith.constant 0 : i32
    %c0_i32_2 = arith.constant 0 : i32
    return %c0_i32, %c0_i32_0, %c0_i32_1 : i32, i32, i32
  }
  func.func @transform_15(%arg0: i32) -> (i32, i32, i32) {
    %c0_i32 = arith.constant 0 : i32
    %c0_i32_0 = arith.constant 0 : i32
    %c0_i32_1 = arith.constant 0 : i32
    %c0_i32_2 = arith.constant 0 : i32
    return %c0_i32, %c0_i32_0, %c0_i32_1 : i32, i32, i32
  }
  func.func @transform_16(%arg0: i32) -> (i32, i32, i32) {
    %c0_i32 = arith.constant 0 : i32
    %c0_i32_0 = arith.constant 0 : i32
    %c0_i32_1 = arith.constant 0 : i32
    %c0_i32_2 = arith.constant 0 : i32
    return %c0_i32, %c0_i32_0, %c0_i32_1 : i32, i32, i32
  }
  func.func @transform_17(%arg0: i32) -> (i32, i32, i32) {
    %c0_i32 = arith.constant 0 : i32
    %c0_i32_0 = arith.constant 0 : i32
    %c0_i32_1 = arith.constant 0 : i32
    %c0_i32_2 = arith.constant 0 : i32
    return %c0_i32, %c0_i32_0, %c0_i32_1 : i32, i32, i32
  }
  func.func @transform_18(%arg0: i32) -> (i32, i32, i32) {
    %c0_i32 = arith.constant 0 : i32
    %c0_i32_0 = arith.constant 0 : i32
    %c0_i32_1 = arith.constant 0 : i32
    %c0_i32_2 = arith.constant 0 : i32
    return %c0_i32, %c0_i32_0, %c0_i32_1 : i32, i32, i32
  }
  func.func @transform_19(%arg0: i32) -> (i32, i32, i32) {
    %c0_i32 = arith.constant 0 : i32
    %c0_i32_0 = arith.constant 0 : i32
    %c0_i32_1 = arith.constant 0 : i32
    %c0_i32_2 = arith.constant 0 : i32
    return %c0_i32, %c0_i32_0, %c0_i32_1 : i32, i32, i32
  }
  func.func @transform_20(%arg0: i32) -> (i32, i32, i32) {
    %c0_i32 = arith.constant 0 : i32
    %c0_i32_0 = arith.constant 0 : i32
    %c0_i32_1 = arith.constant 0 : i32
    return %arg0, %c0_i32, %c0_i32_0 : i32, i32, i32
  }
}

</mosaic_0001>

<bundles_post_ra>
// kernel: tpu_custom_call.1
= control target key start
LH: loop header
LB: loop body
LE: loop exit
PB: predicated region body
PF: predicated region fallthrough
CT: control target
= control target key end

     0   :  { %s4389_s0 = inlined_call_operand.vmem [shape: s32[2,8,1], index: 0, kind: input, shape index: {}]   ;;  %s4390_s1 = inlined_call_operand.vmem [shape: f32[2,8,1], index: 1, kind: input, shape index: {}]   ;;  %s4391_s2 = inlined_call_operand.vmem [shape: f32[2,8,1], index: 2, kind: input, shape index: {}]   ;;  %s4392_s3 = inlined_call_operand.vmem [shape: f32[2,1,8], index: 3, kind: input, shape index: {}]   ;;  %s4393_s4 = inlined_call_operand.vmem [shape: f32[1,32], index: 4, kind: input, shape index: {}]   ;;  %s4394_s5 = inlined_call_operand.vmem [shape: f32[1,32], index: 5, kind: input, shape index: {}]   ;;  %s4395_s6 = inlined_call_operand.vmem [shape: f32[6,32], index: 6, kind: input, shape index: {}]   ;;  %s4396_s7 = inlined_call_operand.vmem [shape: f32[2,4,32,8], index: 7, kind: input, shape index: {}]   ;;  %s4397_s8 = inlined_call_operand.vmem [shape: f32[2,4,32,8], index: 8, kind: input, shape index: {}]   ;;  %s4398_s9 = inlined_call_operand.vmem [shape: f32[2,4,32,8], index: 9, kind: input, shape index: {}]   ;;  %s4399_s10 = inlined_call_operand.vmem [shape: f32[2,4,8,32], index: 10, kind: input, shape index: {}]   ;;  %s4400_s11 = inlined_call_operand.vmem [shape: f32[2,1,32], index: 11, kind: input, shape index: {}]   ;;  %s4401_s12 = inlined_call_operand.vmem [shape: f32[2,1,32], index: 12, kind: input, shape index: {}]   ;;  %s4402_s13 = inlined_call_operand.vmem [shape: f32[2,1,32], index: 13, kind: input, shape index: {}]   ;;  %s4403_s14 = inlined_call_operand.vmem [shape: f32[2,32,64], index: 14, kind: input, shape index: {}]   ;;  %s4404_s15 = inlined_call_operand.vmem [shape: f32[2,1,64], index: 15, kind: input, shape index: {}]   ;;  %s4405_s16 = inlined_call_operand.vmem [shape: f32[2,64,32], index: 16, kind: input, shape index: {}]   ;;  %s4406_s17 = inlined_call_operand.vmem [shape: f32[2,1,32], index: 17, kind: input, shape index: {}]   ;;  %s4407_s18 = inlined_call_operand.vmem [shape: f32[2,1,32], index: 18, kind: input, shape index: {}]   ;;  %s4408_s19 = inlined_call_operand.vmem [shape: f32[2,1,32], index: 19, kind: input, shape index: {}]   ;;  %s4409_s20 = inlined_call_operand.hbm [shape: f32[2,8,32], index: 20, kind: output, shape index: {}]  }
   0x1   :  { %4420 = sst [smem:[#allocation13_spill]] %s4389_s0 }
   0x2   :  { %4421 = sst [smem:[#allocation14_spill]] %s4390_s1 }
   0x3   :  { %4422 = sst [smem:[#allocation15_spill]] %s4391_s2 }
   0x4   :  { %4423 = sst [smem:[#allocation16_spill]] %s4392_s3 }
   0x5   :  { %4424 = sst [smem:[#allocation17_spill]] %s4393_s4 }
   0x6   :  { %4425 = sst [smem:[#allocation18_spill]] %s4407_s18 }
   0x7   :  { %4426 = sst [smem:[#allocation19_spill]] %s4408_s19 }
   0x8   :  { %4427 = sst [smem:[#allocation20_spill]] %s4409_s20 }
   0x9   :  { %25 = vsyncpa [#allocation3], 0 }
   0xa   :  { %27 = vsyncpa [#allocation3 + $0x1], 0  ;;  %s3939_s1 = smov 0   ;;  %s3941_s22 = smov 0  }
   0xb   :  { %s3943_s23 = smov 0   ;;  %s3945_s24 = smov 0  }
   0xc LB: > { %4428 = sst [smem:[#allocation5_spill]] %s3799_s1  ;;  %s3960_s2 = sadd.s32 4294967295, %s3811_s24   ;;  %s3811_s24 = sphi %s3945_s24, %s4455_s24   ;;  %s3807_s23 = sphi %s3943_s23, %s4457_s23   ;;  %s3803_s22 = sphi %s3941_s22, %s4459_s22   ;;  %s3799_s1 = sphi %s3939_s1, %s4458_s1  }
   0xd   : > { %4429 = sst [smem:[#allocation6_spill]] %s3807_s23  ;;  %s3164_s25 = sadd.s32 4294967294, %s3811_s24  }
   0xe   : > { %4430 = sst [smem:[#allocation7_spill]] %s3811_s24  ;;  %s3964_s3 = sadd.s32 1, %s3811_s24  }
   0xf   : > { %4431 = sst [smem:[#allocation8_spill]] %s3960_s2  ;;  %s480_s26 = sadd.s32 1, %s3807_s23 }
  0x10   : > { %4432 = sst [smem:[#allocation9_spill]] %s3964_s3  ;;  %s477_s27 = ssub.s32 %s3811_s24, %s3964_s3 }
  0x11   : > { %p490_p0 = scmp.ne.s32.totalorder %s3807_s23, %s3803_s22  ;;  %p478_p1 = scmp.eq.s32.totalorder %s477_s27, 0 }
  0x12   : > { %p491_p2 = scmp.eq.s32.totalorder %s3960_s2, 1  ;;  %p496_p3 = scmp.ne.s32.totalorder %s3803_s22, %s3799_s1 }
  0x13   : > { %p497_p4 = scmp.eq.s32.totalorder %s3164_s25, 1  ;;  %p3167_p7 = scmp.ge.s32.totalorder %s3811_s24, 1 }
  0x14   : > { %s3975_s28 = scalar_select %p478_p1, %s3807_s23, %s480_s26  }
  0x15   : > { %p3977_p5 = por %p491_p2, %p490_p0  ;;  %p3981_p6 = por %p497_p4, %p496_p3 }
  0x16   : > { %4433 = sst [smem:[#allocation10_spill]] %s3975_s28  ;;  %p590_p8 = scmp.lt.s32.totalorder %s3811_s24, 3 }
  0x17   : > { %s4434_s4 = scalar_select %p3977_p5, 1, 0 }
  0x18   : > { %s4436_s29 = scalar_select %p3981_p6, 1, 0 }
  0x19   : > { %4435 = sst [smem:[#allocation11_spill]] %s4434_s4  ;;  %p591_p9 = pnand %p3167_p7, %p590_p8 }
  0x1a   : > { %4437 = sst [smem:[#allocation12_spill]] %s4436_s29  ;;  %p658_p10 = scmp.lt.s32.totalorder (!%p591_p9), %s3960_s2, 1  ;;  %v809_v0 = vlaneseq (!%p591_p9)  ;;  %v3821_v1 = vmov (!%p591_p9), 0   ;;  %v3822_v3 = vmov (!%p591_p9), 0.0   ;;  %v817_v10 = vld [vmem:[%s4395_s6] sm:$0x3f] (!%p591_p9) }
  0x1b   : > { %594 = sbr.rel (%p591_p9) target bundleno = 2696 (0xa88), region = 100  ;;  %3713 = vset.pattern.permute.xlu0 (!%p591_p9), %v3821_v1  ;;  %3714 = vset.pattern.permute.xlu1 (!%p591_p9), %v3821_v1  ;;  %s4438_s25 = sld [smem:[#allocation16_spill]] (!%p591_p9)  ;;  %vm822_vm1 = vcmask (!%p591_p9), 1045504   ;;  %vm3823_vm3 = vmmov (!%p591_p9), 0   ;;  %vm818_vm6 = vcmask (!%p591_p9), 48128  }
  0x1c   : > { %v897_v2 = vshrl.u32 (!%p591_p9), %v809_v0, 7  ;;  %3325 = vmatprep.subr.mxu0 (!%p591_p9), %v3822_v3  ;;  %s4439_s3 = sld [smem:[#allocation13_spill]] (!%p591_p9)  ;;  %s4440_s20 = sld [smem:[#allocation14_spill]] (!%p591_p9)  ;;  %v810_v7 = vand.u32 (!%p591_p9), 127, %v809_v0  ;;  %3327 = vmatprep.mubr.msk.f32.mxu0 (!%p591_p9), %vm3823_vm3, %v3822_v3  ;;  %v3173_v17 = vld [vmem:[%s4394_s5] ss:$0 sm:$0xff] (!%p591_p9) }
  0x1d   : > { %s4441_s18 = sld [smem:[#allocation15_spill]] (!%p591_p9)  ;;  %3326 = vmatpush3.msk.msra.mxu0 (!%p591_p9), %vm822_vm1, %v817_v10  ;;  %s4444_s23 = sld [smem:[#allocation17_spill]] (!%p591_p9)  ;;  %v3824_v32 = vmov (!%p591_p9), 2102212464   ;;  %v3825_v34 = vmov (!%p591_p9), 920167782  }
  0x1e   : > { %v902_v4 = vsub.s32 (!%p591_p9), 0, %v897_v2  ;;  %vm898_vm2 = vcmp.gt.s32.totalorder (!%p591_p9), %v810_v7, %v897_v2  ;;  %v3826_v38 = vmov (!%p591_p9), 1326507024   ;;  %v3827_v40 = vmov (!%p591_p9), 683565275   ;;  %s4048_s28 = smov (!%p591_p9), 0  }
  0x1f   : > { %v3828_v42 = vmov (!%p591_p9), 2475754826   ;;  %v3829_v45 = vmov (!%p591_p9), 2131351028  }
  0x22   : > { %s659_s30 = scalar_select %p658_p10, %s3960_s2, 1 }
  0x23   : > { %v3172_v16 = vld [vmem:[%s4444_s23] ss:$0 sm:$0xff] }
  0x24   : > { %s672_s26 = scalar_lea.vmem %s4438_s25, %s659_s30  ;;  %s3169_s27 = sshll.u32 %s659_s30, 3 }
  0x25   : > { %v676_v5 = vld [vmem:[%s672_s26] sm:$0x1]  ;;  %s661_s29 = scalar_lea.vmem %s4439_s3, %s3169_s27  ;;  %s665_s4 = scalar_lea.vmem %s4440_s20, %s3169_s27 }
  0x26   : > { %vm677_vm0 = vcmp.gt.f32.partialorder %v676_v5, 0.5  ;;  %v673_v6 = vld [vmem:[%s661_s29] sm:$0xff]  ;;  %s669_s0 = scalar_lea.vmem %s4441_s18, %s3169_s27  ;;  %s655_s20 = sand.u32 1, %s3803_s22  }
  0x27   : > { %v899_v8 = vsel %vm677_vm0, 1, %v3821_v1  ;;  %812 = vperm.xlu0 %3713, %v673_v6   ;;  %v675_v9 = vld [vmem:[%s669_s0] sm:$0xff]  ;;  %s4007_s1 = sshll.u32 %s655_s20, 3 }
  0x28   : > { %v674_v11 = vld [vmem:[%s665_s4] sm:$0xff]  ;;  %805 = vperm.xlu1 %3714, %v675_v9   ;;  %v903_v12 = vrot.slane %v899_v8, %v902_v4  ;;  %s657_s3 = scalar_lea.vmem [#allocation2], %s4007_s1 }
  0x2a   : > { %vm904_vm4 = vcmp.eq.s32.totalorder %v903_v12, 1 }
  0x2b   : > { %681 = vperm.xlu0 %3713, %v674_v11   ;;  %vm4009_vm5 = vmor %vm898_vm2, %vm904_vm4 }
  0xa6   : > { %v813_v14 = vpop.permute.xlu0 %812 }
  0xa7   : > { %vm814_vm7 = vcmp.eq.s32.totalorder %v813_v14, %v810_v7 }
  0xa8   : > { %v3178_v15 = vsel %vm814_vm7, 1.0, %v3822_v3 }
  0xa9   : > { %3328 = vmatmul.mubr.msk.f32.vlgmr.msra.gmra.mrb[0].mxu0 %vm818_vm6, %v3178_v15 }
  0xaa   : > { %v682_v18 = vpop.permute.xlu0 %681 }
  0xab   : > { %v690_v19 = vmul.f32 %v3172_v16, %v682_v18 }
  0xad   : > { %v4019_v20 = vadd.f32 %v3173_v17, %v690_v19 }
  0xaf   : > { %v702_v21 = vand.u32 2139095040, %v4019_v20  ;;  %v699_v22 = vand.u32 2147483647, %v4019_v20  ;;  %vm701_vm15 = vcmp.lt.s32.totalorder %v4019_v20, 0  ;;  %vm791_vm4 = vweird.f32 %v4019_v20 }
  0xb1   : > { %v703_v23 = vshrl.u32 %v702_v21, 23  ;;  %v706_v25 = vand.u32 8388607, %v699_v22  ;;  %vm700_vm0 = vcmp.le.f32.partialorder %v699_v22, 0.7853982 }
  0xb3   : > { %v3174_v24 = vadd.s32 4294967169, %v703_v23  ;;  %v707_v28 = vor.u32 8388608, %v706_v25 }
  0xb5   : > { %v709_v26 = vadd.s32 1, %v3174_v24  ;;  %v747_v36 = vshll.u32 %v707_v28, 8 }
  0xb7   : > { %vm710_vm8 = vcmp.gt.s32.totalorder %v709_v26, 0 }
  0xb8   : > { %v711_v27 = vsel %vm710_vm8, %v709_v26, 0 }
  0xb9   : > { %v713_v29 = vand.u32 31, %v711_v27  ;;  %v712_v30 = vshrl.u32 %v711_v27, 5 }
  0xbb   : > { %v714_v31 = vsub.s32 32, %v713_v29  ;;  %v725_v33 = vshll.u32 %v3824_v32, %v713_v29  ;;  %v728_v35 = vshll.u32 %v3825_v34, %v713_v29  ;;  %v716_v41 = vshll.u32 %v3827_v40, %v713_v29 }
  0xbc   : > { %v719_v44 = vshll.u32 %v3828_v42, %v713_v29  ;;  %v722_v47 = vshll.u32 %v3829_v45, %v713_v29  ;;  %vm734_vm9 = vcmp.lt.s32.totalorder %v712_v30, 4  ;;  %vm731_vm10 = vcmp.lt.s32.totalorder %v712_v30, 1 }
  0xbd   : > { %v726_v37 = vshrl.u32 %v3825_v34, %v714_v31  ;;  %v729_v39 = vshrl.u32 %v3826_v38, %v714_v31  ;;  %v717_v43 = vshrl.u32 %v3828_v42, %v714_v31  ;;  %v720_v46 = vshrl.u32 %v3829_v45, %v714_v31 }
  0xbe   : > { %v723_v48 = vshrl.u32 %v3824_v32, %v714_v31  ;;  %v715_v52 = vshrl.u32 %v3827_v40, %v714_v31  ;;  %vm732_vm11 = vcmp.lt.s32.totalorder %v712_v30, 2  ;;  %vm733_vm12 = vcmp.lt.s32.totalorder %v712_v30, 3 }
  0xbf   : > { %v727_v49 = vor.u32 %v726_v37, %v725_v33  ;;  %v730_v50 = vor.u32 %v729_v39, %v728_v35  ;;  %v718_v51 = vor.u32 %v717_v43, %v716_v41  ;;  %v721_v53 = vor.u32 %v720_v46, %v719_v44 }
  0xc0   : > { %v724_v54 = vor.u32 %v723_v48, %v722_v47  ;;  %v4039_v48 = vpop.permute.xlu1 %805 }
  0xc1   : > { %v740_v55 = vsel %vm734_vm9, %v727_v49, 920167782  ;;  %v744_v56 = vsel %vm734_vm9, %v730_v50, 1326507024  ;;  %v739_v58 = vsel %vm731_vm10, %v718_v51, %v721_v53  ;;  %v735_v61 = vsel %vm731_vm10, %v715_v52, %v718_v51 }
  0xc2   : > { %v736_v57 = vsel %vm734_vm9, %v724_v54, 2102212464  ;;  %v741_v59 = vsel %vm733_vm12, %v724_v54, %v740_v55  ;;  %v743_v60 = vsel %vm731_vm10, %v721_v53, %v724_v54  ;;  %v745_v0 = vsel %vm733_vm12, %v727_v49, %v744_v56 }
  0xc3   : > { %v737_v62 = vsel %vm733_vm12, %v721_v53, %v736_v57  ;;  %v742_v63 = vsel %vm732_vm11, %v739_v58, %v741_v59  ;;  %v746_v1 = vsel %vm732_vm11, %v743_v60, %v745_v0 }
  0xc4   : > { %v4025_v2 = vmul.u32.u64.low %v747_v36, %v742_v63  ;;  %v4026_v3 = vmul.u32.u64.high %v747_v36, %v742_v63, %v4025_v2  ;;  %v4028_v4 = vmul.u32.u64.low %v747_v36, %v746_v1  ;;  %v4029_v5 = vmul.u32.u64.high %v747_v36, %v746_v1, %v4028_v4 }
  0xc5   : > { %v738_v6 = vsel %vm732_vm11, %v735_v61, %v737_v62 }
  0xc6   : > { %v757_v7 = vadd.s32 1, %v4026_v3  ;;  %v754_v8 = vmul.u32 %v747_v36, %v738_v6  ;;  %vm756_vm13 = vc.u32 %v4029_v5, %v4025_v2  ;;  %v755_v23 = vadd.s32 %v4025_v2, %v4029_v5 }
  0xc8   : > { %v758_v9 = vsel %vm756_vm13, %v757_v7, %v4026_v3 }
  0xc9   : > { %v759_v10 = vadd.s32 %v758_v9, %v754_v8 }
  0xcb   : > { %v760_v11 = vadd.s32 536870912, %v759_v10 }
  0xcd   : > { %v761_v12 = vshrl.u32 %v760_v11, 30 }
  0xcf   : > { %v762_v14 = vshll.u32 %v761_v12, 30  ;;  %v785_v35 = vsub.s32 4, %v761_v12 }
  0xd1   : > { %v763_v15 = vsub.s32 %v759_v10, %v762_v14  ;;  %v786_v38 = vsel %vm701_vm15, %v785_v35, %v761_v12 }
  0xd2   : > { %v788_v40 = vsel %vm700_vm0, 0, %v786_v38 }
  0xd3   : > { %v765_v16 = vsub.s32 0, %v763_v15  ;;  %v792_v41 = vadd.s32 3, %v788_v40 }
  0xd5   : > { %v3175_v17 = vmin.u32 %v765_v16, %v763_v15  ;;  %v793_v42 = vand.u32 3, %v792_v41 }
  0xd7   : > { %v767_v18 = vclz %v3175_v17  ;;  %vm798_vm1 = vcmp.eq.s32.totalorder %v793_v42, 2  ;;  %vm795_vm2 = vcmp.eq.s32.totalorder %v793_v42, 0  ;;  %vm794_vm3 = vcmp.lt.s32.totalorder %v793_v42, 2 }
  0xd9   : > { %v3176_v19 = vadd.s32 4294967294, %v767_v18 }
  0xdb   : > { %vm3177_vm14 = vcmp.lt.s32.totalorder %v3176_v19, 0 }
  0xdc   : > { %v770_v21 = vsel %vm3177_vm14, 0, %v3176_v19 }
  0xdd   : > { %v771_v24 = vsub.s32 32, %v770_v21  ;;  %v775_v25 = vsub.s32 4294967266, %v770_v21  ;;  %v772_v26 = vshll.u32 %v763_v15, %v770_v21 }
  0xdf   : > { %v773_v27 = vshrl.u32 %v755_v23, %v771_v24  ;;  %v776_v28 = vadd.s32 127, %v775_v25 }
  0xe1   : > { %v774_v29 = vor.u32 %v773_v27, %v772_v26  ;;  %v777_v30 = vshll.u32 %v776_v28, 23 }
  0xe3   : > { %v778_v31 = vor.u32 4788187, %v777_v30  ;;  %v781_v33 = vcvt.s32.f32 %v774_v29 }
  0xe5   : > { %v779_v32 = vand.u32 2147483647, %v778_v31 }
  0xe7   : > { %v782_v34 = vmul.f32 %v781_v33, %v779_v32 }
  0xe9   : > { %v783_v36 = vxor.u32 2147483648, %v782_v34 }
  0xeb   : > { %v784_v37 = vsel %vm701_vm15, %v783_v36, %v782_v34 }
  0xec   : > { %v787_v39 = vsel %vm700_vm0, %v4019_v20, %v784_v37 }
  0xed   : > { %3715 = vcosq.f32 %v787_v39 }
  0xee   : > { %3717 = vsinq.f32 %v787_v39 }
  0xf7   : > { %v3716_v43 = vpop.eup %3715 }
  0xf8   : > { %v3718_v44 = vpop.eup %3717  ;;  %v799_v45 = vxor.u32 2147483648, %v3716_v43 }
  0xf9   : > { %v796_v46 = vxor.u32 2147483648, %v3718_v44 }
  0xfa   : > { %v800_v47 = vsel %vm798_vm1, %v799_v45, %v3718_v44 }
  0xfb   : > { %v797_v22 = vsel %vm795_vm2, %v3716_v43, %v796_v46 }
  0xfc   : > { %v801_v49 = vsel %vm794_vm3, %v797_v22, %v800_v47 }
  0xfd   : > { %v802_v50 = vsel %vm791_vm4, nan, %v801_v49 }
  0xfe   : > { %v4043_v51 = vmul.f32 %v4039_v48, %v802_v50 }
 0x17c   : > { %v892_v52 = vpop.f32.mrb[0].mxu0  }
 0x17d   : > { %v3329_v53 = vpop.f32.mrb[1].mxu0 }
 0x17e LB: >> { %v3830_v20 = vmov 0.0|0.0   ;;  %s4057_s4 = sshll.u32 %s3819_s28, 7  ;;  %vm3831_vm6 = vmmov 0   ;;  %v3832_v54 = vmov 0.0   ;;  %v4084_v7 = vadd.f32 %v3815_v52, %v4043_v51  ;;  %s3206_s23 = sshll.u32 %s3819_s28, 5  ;;  %s3819_s28 = sphi %s4048_s28, %s913_s28   ;;  %v3815_v52 = vphi %v892_v52, %v4447_v52  }
 0x17f   : >> { %3552 = vmatprep.subr.bf16.mxu0 %v3830_v20  ;;  %3558 = vmatprep.subr.bf16.mxu1 %v3830_v20  ;;  %s4067_s26 = scalar_lea.vmem %s4396_s7, %s4057_s4  ;;  %vm934_vm7 = vcmask 261120   ;;  %s4093_s30 = scalar_lea.vmem %s4397_s8, %s4057_s4  ;;  %vm1812_vm8 = vcmask 64512   ;;  %vm2922_vm9 = vcmask 523264  }
 0x180   : >> { %3338 = vmatprep.mubr.msk.f32.mxu0 %vm3831_vm6, %v3832_v54  ;;  %3349 = vmatprep.mubr.msk.f32.mxu1 %vm3831_vm6, %v3832_v54  ;;  %v918_v55 = vld [vmem:[%s4067_s26] sm:$0xff]  ;;  %v919_v56 = vld [vmem:[%s4067_s26 + $0x8] sm:$0xff]  ;;  %v920_v60 = vld [vmem:[%s4067_s26 + $0x10] sm:$0xff]  ;;  %s4139_s19 = scalar_lea.vmem %s4398_s9, %s4057_s4  ;;  %s2462_s4 = scalar_lea.vmem %s4399_s10, %s3206_s23 }
 0x181   : >> { %v922_v57 = vld [vmem:[%s4067_s26 + $0x20] sm:$0xff]  ;;  %v3553_v58 = vpack.c.bf16 %v919_v56, %v918_v55  ;;  %v923_v59 = vld [vmem:[%s4067_s26 + $0x28] sm:$0xff]  ;;  %v921_v61 = vld [vmem:[%s4067_s26 + $0x18] sm:$0xff]  ;;  %s2778_s2 = scalar_lea.vmem %s4402_s13, %s3819_s28 }
 0x182   : >> { %v3559_v62 = vpack.c.bf16 %v923_v59, %v922_v57  ;;  %v924_v63 = vld [vmem:[%s4067_s26 + $0x30] sm:$0xff]  ;;  %v925_v0 = vld [vmem:[%s4067_s26 + $0x38] sm:$0xff]  ;;  %v3556_v1 = vpack.c.bf16 %v921_v61, %v920_v60  ;;  %v926_v3 = vld [vmem:[%s4067_s26 + $0x40] sm:$0xff] }
 0x183   : >> { %3554 = vmatpush3.bf16.msra.mxu0 %v3553_v58  ;;  %v3562_v2 = vpack.c.bf16 %v925_v0, %v924_v63  ;;  %v927_v4 = vld [vmem:[%s4067_s26 + $0x48] sm:$0xff]  ;;  %v930_v5 = vld [vmem:[%s4067_s26 + $0x60] sm:$0xff]  ;;  %v928_v10 = vld [vmem:[%s4067_s26 + $0x50] sm:$0xff] }
 0x184   : >> { %3560 = vmatpush3.bf16.msra.mxu1 %v3559_v62  ;;  %3555 = vmatprep.subr.bf16.mxu0 %v3830_v20  ;;  %v931_v6 = vld [vmem:[%s4067_s26 + $0x68] sm:$0xff]  ;;  %v3565_v8 = vpack.c.bf16 %v927_v4, %v926_v3  ;;  %v929_v11 = vld [vmem:[%s4067_s26 + $0x58] sm:$0xff]  ;;  %v932_v12 = vld [vmem:[%s4067_s26 + $0x70] sm:$0xff] }
 0x185   : >> { %3561 = vmatprep.subr.bf16.mxu1 %v3830_v20  ;;  %v3571_v9 = vpack.c.bf16 %v931_v6, %v930_v5  ;;  %v933_v14 = vld [vmem:[%s4067_s26 + $0x78] sm:$0xff]  ;;  %v3568_v15 = vpack.c.bf16 %v929_v11, %v928_v10  ;;  %v1219_v17 = vld [vmem:[%s4093_s30] sm:$0xff]  ;;  %v1220_v18 = vld [vmem:[%s4093_s30 + $0x8] sm:$0xff]  ;;  %s2766_s26 = scalar_lea.vmem %s4400_s11, %s3819_s28 }
 0x186   : >> { %v3574_v16 = vpack.c.bf16 %v933_v14, %v932_v12  ;;  %v1223_v19 = vld [vmem:[%s4093_s30 + $0x20] sm:$0xff]  ;;  %v1224_v21 = vld [vmem:[%s4093_s30 + $0x28] sm:$0xff]  ;;  %v3577_v23 = vpack.c.bf16 %v1220_v18, %v1219_v17  ;;  %v1221_v25 = vld [vmem:[%s4093_s30 + $0x10] sm:$0xff] }
 0x187   : >> { %3557 = vmatpush3.bf16.msra.mxu0 %v3556_v1  ;;  %v3583_v24 = vpack.c.bf16 %v1224_v21, %v1223_v19  ;;  %v1222_v26 = vld [vmem:[%s4093_s30 + $0x18] sm:$0xff]  ;;  %v1225_v27 = vld [vmem:[%s4093_s30 + $0x30] sm:$0xff]  ;;  %v1227_v31 = vld [vmem:[%s4093_s30 + $0x40] sm:$0xff] }
 0x188   : >> { %3563 = vmatpush3.bf16.msra.mxu1 %v3562_v2  ;;  %3564 = vmatprep.subr.bf16.mxu0 %v3830_v20  ;;  %v1226_v28 = vld [vmem:[%s4093_s30 + $0x38] sm:$0xff]  ;;  %v3580_v29 = vpack.c.bf16 %v1222_v26, %v1221_v25  ;;  %v1228_v32 = vld [vmem:[%s4093_s30 + $0x48] sm:$0xff]  ;;  %v1231_v33 = vld [vmem:[%s4093_s30 + $0x60] sm:$0xff] }
 0x189   : >> { %3570 = vmatprep.subr.bf16.mxu1 %v3830_v20  ;;  %v3586_v30 = vpack.c.bf16 %v1226_v28, %v1225_v27  ;;  %v1232_v34 = vld [vmem:[%s4093_s30 + $0x68] sm:$0xff]  ;;  %v3589_v35 = vpack.c.bf16 %v1228_v32, %v1227_v31  ;;  %v1229_v37 = vld [vmem:[%s4093_s30 + $0x50] sm:$0xff]  ;;  %v1230_v38 = vld [vmem:[%s4093_s30 + $0x58] sm:$0xff] }
 0x18a   : >> { %3339 = vmatmul.mubr.msk.f32.vlgmr.msra.gmra.mrb[0].mxu0 %vm934_vm7, %v4084_v7  ;;  %v3595_v36 = vpack.c.bf16 %v1232_v34, %v1231_v33  ;;  %v1233_v39 = vld [vmem:[%s4093_s30 + $0x70] sm:$0xff]  ;;  %v1234_v40 = vld [vmem:[%s4093_s30 + $0x78] sm:$0xff]  ;;  %v3592_v41 = vpack.c.bf16 %v1230_v38, %v1229_v37  ;;  %v1516_v43 = vld [vmem:[%s4139_s19] sm:$0xff]  ;;  %s2809_s30 = scalar_lea.vmem %s4403_s14, %s3206_s23 }
 0x18b   : >> { %3350 = vmatmul.mubr.msk.f32.vlgmr.msra.gmra.mrb[0].mxu1 %vm934_vm7, %v4084_v7  ;;  %3566 = vmatpush3.bf16.msra.mxu0 %v3565_v8  ;;  %v3598_v42 = vpack.c.bf16 %v1234_v40, %v1233_v39  ;;  %v1517_v44 = vld [vmem:[%s4139_s19 + $0x8] sm:$0xff]  ;;  %v1518_v46 = vld [vmem:[%s4139_s19 + $0x10] sm:$0xff]  ;;  %v1519_v47 = vld [vmem:[%s4139_s19 + $0x18] sm:$0xff] }
 0x18c   : >> { %3572 = vmatpush3.bf16.msra.mxu1 %v3571_v9  ;;  %3567 = vmatprep.subr.bf16.mxu0 %v3830_v20  ;;  %v3601_v45 = vpack.c.bf16 %v1517_v44, %v1516_v43  ;;  %v3604_v22 = vpack.c.bf16 %v1519_v47, %v1518_v46  ;;  %v1520_v49 = vld [vmem:[%s4139_s19 + $0x20] sm:$0xff]  ;;  %v1521_v50 = vld [vmem:[%s4139_s19 + $0x28] sm:$0xff]  ;;  %v1522_v57 = vld [vmem:[%s4139_s19 + $0x30] sm:$0xff] }
 0x18d   : >> { %3573 = vmatprep.subr.bf16.mxu1 %v3830_v20  ;;  %3360 = vmatprep.mubr.msk.f32.mxu0 %vm3831_vm6, %v3832_v54  ;;  %v1524_v52 = vld [vmem:[%s4139_s19 + $0x40] sm:$0xff]  ;;  %v3607_v53 = vpack.c.bf16 %v1521_v50, %v1520_v49  ;;  %v1525_v55 = vld [vmem:[%s4139_s19 + $0x48] sm:$0xff]  ;;  %v1523_v58 = vld [vmem:[%s4139_s19 + $0x38] sm:$0xff] }
 0x18e   : >> { %3371 = vmatprep.mubr.msk.f32.mxu1 %vm3831_vm6, %v3832_v54  ;;  %v3613_v56 = vpack.c.bf16 %v1525_v55, %v1524_v52  ;;  %v1526_v59 = vld [vmem:[%s4139_s19 + $0x50] sm:$0xff]  ;;  %v3610_v60 = vpack.c.bf16 %v1523_v58, %v1522_v57  ;;  %v1527_v61 = vld [vmem:[%s4139_s19 + $0x58] sm:$0xff]  ;;  %v1528_v63 = vld [vmem:[%s4139_s19 + $0x60] sm:$0xff] }
 0x18f   : >> { %3569 = vmatpush3.bf16.msra.mxu0 %v3568_v15  ;;  %v3616_v62 = vpack.c.bf16 %v1527_v61, %v1526_v59  ;;  %v1529_v0 = vld [vmem:[%s4139_s19 + $0x68] sm:$0xff]  ;;  %v1530_v2 = vld [vmem:[%s4139_s19 + $0x70] sm:$0xff]  ;;  %v1531_v3 = vld [vmem:[%s4139_s19 + $0x78] sm:$0xff]  ;;  %s2776_s19 = scalar_lea.vmem %s4401_s12, %s3819_s28 }
 0x190   : >> { %3575 = vmatpush3.bf16.msra.mxu1 %v3574_v16  ;;  %3576 = vmatprep.subr.bf16.mxu0 %v3830_v20  ;;  %v3619_v1 = vpack.c.bf16 %v1529_v0, %v1528_v63  ;;  %v3622_v4 = vpack.c.bf16 %v1531_v3, %v1530_v2 }
 0x191   : >> { %3582 = vmatprep.subr.bf16.mxu1 %v3830_v20 }
 0x192   : >> { %3361 = vmatmul.mubr.msk.f32.vlgmr.msra.gmra.mrb[2].mxu0 %vm934_vm7, %v4084_v7 }
 0x193   : >> { %3372 = vmatmul.mubr.msk.f32.vlgmr.msra.gmra.mrb[2].mxu1 %vm934_vm7, %v4084_v7  ;;  %3578 = vmatpush3.bf16.msra.mxu0 %v3577_v23 }
 0x194   : >> { %3584 = vmatpush3.bf16.msra.mxu1 %v3583_v24  ;;  %3579 = vmatprep.subr.bf16.mxu0 %v3830_v20 }
 0x195   : >> { %3585 = vmatprep.subr.bf16.mxu1 %v3830_v20  ;;  %3382 = vmatprep.mubr.msk.f32.mxu0 %vm3831_vm6, %v3832_v54 }
 0x196   : >> { %3393 = vmatprep.mubr.msk.f32.mxu1 %vm3831_vm6, %v3832_v54 }
 0x197   : >> { %3581 = vmatpush3.bf16.msra.mxu0 %v3580_v29 }
 0x198   : >> { %3587 = vmatpush3.bf16.msra.mxu1 %v3586_v30  ;;  %3588 = vmatprep.subr.bf16.mxu0 %v3830_v20 }
 0x199   : >> { %3594 = vmatprep.subr.bf16.mxu1 %v3830_v20 }
 0x19a   : >> { %3383 = vmatmul.mubr.msk.f32.vlgmr.msra.gmra.mrb[4].mxu0 %vm934_vm7, %v4084_v7 }
 0x19b   : >> { %3394 = vmatmul.mubr.msk.f32.vlgmr.msra.gmra.mrb[4].mxu1 %vm934_vm7, %v4084_v7  ;;  %3590 = vmatpush3.bf16.msra.mxu0 %v3589_v35 }
 0x19c   : >> { %3596 = vmatpush3.bf16.msra.mxu1 %v3595_v36  ;;  %3591 = vmatprep.subr.bf16.mxu0 %v3830_v20 }
 0x19d   : >> { %3597 = vmatprep.subr.bf16.mxu1 %v3830_v20  ;;  %3404 = vmatprep.mubr.msk.f32.mxu0 %vm3831_vm6, %v3832_v54 }
 0x19e   : >> { %3415 = vmatprep.mubr.msk.f32.mxu1 %vm3831_vm6, %v3832_v54 }
 0x19f   : >> { %3593 = vmatpush3.bf16.msra.mxu0 %v3592_v41 }
 0x1a0   : >> { %3599 = vmatpush3.bf16.msra.mxu1 %v3598_v42  ;;  %3600 = vmatprep.subr.bf16.mxu0 %v3830_v20 }
 0x1a1   : >> { %3606 = vmatprep.subr.bf16.mxu1 %v3830_v20 }
 0x1a2   : >> { %3405 = vmatmul.mubr.msk.f32.vlgmr.msra.gmra.mrb[6].mxu0 %vm934_vm7, %v4084_v7 }
 0x1a3   : >> { %3416 = vmatmul.mubr.msk.f32.vlgmr.msra.gmra.mrb[6].mxu1 %vm934_vm7, %v4084_v7  ;;  %3602 = vmatpush3.bf16.msra.mxu0 %v3601_v45 }
 0x1a4   : >> { %3603 = vmatprep.subr.bf16.mxu0 %v3830_v20  ;;  %3426 = vmatprep.mubr.msk.f32.mxu0 %vm3831_vm6, %v3832_v54 }
 0x1a5   : >> { %3437 = vmatprep.mubr.msk.f32.mxu1 %vm3831_vm6, %v3832_v54  ;;  %3608 = vmatpush3.bf16.msra.mxu1 %v3607_v53 }
 0x1a6   : >> { %3609 = vmatprep.subr.bf16.mxu1 %v3830_v20 }
 0x1a7   : >> { %3605 = vmatpush3.bf16.msra.mxu0 %v3604_v22 }
 0x1a8   : >> { %3612 = vmatprep.subr.bf16.mxu0 %v3830_v20 }
 0x1a9   : >> { %3611 = vmatpush3.bf16.msra.mxu1 %v3610_v60 }
 0x1aa   : >> { %3427 = vmatmul.mubr.msk.f32.vlgmr.msra.gmra.mrb[8].mxu0 %vm934_vm7, %v4084_v7  ;;  %3618 = vmatprep.subr.bf16.mxu1 %v3830_v20 }
 0x1ab   : >> { %3614 = vmatpush3.bf16.msra.mxu0 %v3613_v56  ;;  %3448 = vmatprep.mubr.msk.f32.mxu0 %vm3831_vm6, %v3832_v54 }
 0x1ac   : >> { %3615 = vmatprep.subr.bf16.mxu0 %v3830_v20  ;;  %3438 = vmatmul.mubr.msk.f32.vlgmr.msra.gmra.mrb[8].mxu1 %vm934_vm7, %v4084_v7 }
 0x1ad   : >> { %3620 = vmatpush3.bf16.msra.mxu1 %v3619_v1  ;;  %3459 = vmatprep.mubr.msk.f32.mxu1 %vm3831_vm6, %v3832_v54 }
 0x1ae   : >> { %3621 = vmatprep.subr.bf16.mxu1 %v3830_v20 }
 0x1af   : >> { %3617 = vmatpush3.bf16.msra.mxu0 %v3616_v62 }
 0x1b0   : >> { %3462 = vmatprep.subr.mxu0 %v3832_v54 }
 0x1b1   : >> { %3623 = vmatpush3.bf16.msra.mxu1 %v3622_v4 }
 0x1b2   : >> { %3449 = vmatmul.mubr.msk.f32.vlgmr.msra.gmra.mrb[10].mxu0 %vm934_vm7, %v4084_v7  ;;  %3477 = vmatprep.subr.mxu1 %v3832_v54 }
 0x1b3   : >> { %3464 = vmatprep.mubr.msk.f32.mxu0 %vm3831_vm6, %v3832_v54 }
 0x1b4   : >> { %3460 = vmatmul.mubr.msk.f32.vlgmr.msra.gmra.mrb[10].mxu1 %vm934_vm7, %v4084_v7 }
 0x1b5   : >> { %3479 = vmatprep.mubr.msk.f32.mxu1 %vm3831_vm6, %v3832_v54 }
 0x25d   : >> { %v1004_v5 = vpop.f32.mrb[0].mxu0 }
 0x25e   : >> { %v3340_v6 = vpop.f32.mrb[1].mxu0  ;;  %v1074_v8 = vpop.f32.mrb[0].mxu1 }
 0x25f   : >> { %v3351_v9 = vpop.f32.mrb[1].mxu1 }
 0x265   : >> { %v1144_v10 = vpop.f32.mrb[2].mxu0 }
 0x266   : >> { %v3362_v11 = vpop.f32.mrb[3].mxu0  ;;  %v1214_v12 = vpop.f32.mrb[2].mxu1 }
 0x267   : >> { %v3373_v14 = vpop.f32.mrb[3].mxu1 }
 0x26d   : >> { %v1301_v15 = vpop.f32.mrb[4].mxu0 }
 0x26e   : >> { %v3384_v16 = vpop.f32.mrb[5].mxu0  ;;  %3463 = vmatpush3.xpose.msk.msra.mxu0 %vm1812_vm8, %v1301_v15  ;;  %v1371_v17 = vpop.f32.mrb[4].mxu1 }
 0x26f   : >> { %v3395_v18 = vpop.f32.mrb[5].mxu1  ;;  %3467 = vmatprep.subr.mxu0 %v3832_v54 }
 0x271   : >> { %3465 = vmatmul.mubr.msk.f32.vlgmr.msra.gmra.mrb[12].mxu0 %vm1812_vm8, %v1004_v5 }
 0x272   : >> { %3468 = vmatpush3.xpose.msk.msra.mxu0 %vm1812_vm8, %v1371_v17  ;;  %3469 = vmatprep.mubr.msk.f32.mxu0 %vm3831_vm6, %v3832_v54 }
 0x273   : >> { %3472 = vmatprep.subr.mxu0 %v3832_v54 }
 0x275   : >> { %v1441_v19 = vpop.f32.mrb[6].mxu0  ;;  %3470 = vmatmul.mubr.msk.f32.vlgmr.msra.gmra.mrb[14].mxu0 %vm1812_vm8, %v1074_v8 }
 0x276   : >> { %v1511_v21 = vpop.f32.mrb[6].mxu1  ;;  %v3406_v23 = vpop.f32.mrb[7].mxu0  ;;  %3473 = vmatpush3.xpose.msk.msra.mxu0 %vm1812_vm8, %v1441_v19  ;;  %3474 = vmatprep.mubr.msk.f32.mxu0 %vm3831_vm6, %v3832_v54 }
 0x277   : >> { %3478 = vmatpush3.xpose.msk.msra.mxu1 %vm1812_vm8, %v1511_v21  ;;  %v3417_v24 = vpop.f32.mrb[7].mxu1  ;;  %3482 = vmatprep.subr.mxu0 %v3832_v54 }
 0x278   : >> { %3487 = vmatprep.subr.mxu1 %v3832_v54 }
 0x279   : >> { %3475 = vmatmul.mubr.msk.f32.vlgmr.msra.gmra.mrb[16].mxu0 %vm1812_vm8, %v1144_v10 }
 0x27a   : >> { %3480 = vmatmul.mubr.msk.f32.vlgmr.msra.gmra.mrb[12].mxu1 %vm1812_vm8, %v1214_v12  ;;  %3484 = vmatprep.mubr.msk.f32.mxu0 %vm3831_vm6, %v3832_v54 }
 0x27b   : >> { %3489 = vmatprep.mubr.msk.f32.mxu1 %vm3831_vm6, %v3832_v54 }
 0x27d   : >> { %v1598_v25 = vpop.f32.mrb[8].mxu0 }
 0x27e   : >> { %v3428_v26 = vpop.f32.mrb[9].mxu0  ;;  %3483 = vmatpush3.msra.mxu0 %v1598_v25 }
 0x27f   : >> { %3492 = vmatprep.subr.mxu0 %v3832_v54  ;;  %v1668_v27 = vpop.f32.mrb[8].mxu1 }
 0x280   : >> { %v3439_v28 = vpop.f32.mrb[9].mxu1  ;;  %3488 = vmatpush3.msra.mxu1 %v1668_v27  ;;  %v2463_v27 = vld [vmem:[%s2462_s4] sm:$0xff] }
 0x281   : >> { %3497 = vmatprep.subr.mxu1 %v3832_v54  ;;  %v2464_v28 = vld [vmem:[%s2462_s4 + $0x8] sm:$0xff] }
 0x285   : >> { %v4225_v29 = vpop.f32.mrb[10].mxu0 }
 0x286   : >> { %v3450_v30 = vpop.f32.mrb[11].mxu0 }
 0x287   : >> { %v4228_v31 = vpop.f32.mrb[10].mxu1 }
 0x288   : >> { %v3461_v32 = vpop.f32.mrb[11].mxu1 }
 0x289   : >> { %v2466_v32 = vld [vmem:[%s2462_s4 + $0x18] sm:$0xff] }
 0x344   : >> { %v1885_v33 = vpop.f32.mrb[12].mxu0 }
 0x345   : >> { %v2117_v34 = vmul.f32 0.35355338, %v1885_v33  ;;  %v3466_v35 = vpop.f32.mrb[13].mxu0 }
 0x347   : >> { %v2121_v36 = vsel %vm4009_vm5, -1e+09, %v2117_v34 }
 0x348   : >> { %v1961_v37 = vpop.f32.mrb[14].mxu0  ;;  %v2125_v38 = vsel %vm1812_vm8, %v2121_v36, -inf }
 0x349   : >> { %v2118_v39 = vmul.f32 0.35355338, %v1961_v37  ;;  %2126 = vmax.xlane.f32.xlu0 %v2125_v38  ;;  %v3471_v40 = vpop.f32.mrb[15].mxu0 }
 0x34b   : >> { %v2122_v41 = vsel %vm4009_vm5, -1e+09, %v2118_v39 }
 0x34c   : >> { %v2037_v42 = vpop.f32.mrb[16].mxu0  ;;  %v2128_v43 = vsel %vm1812_vm8, %v2122_v41, -inf }
 0x34d   : >> { %v2119_v44 = vmul.f32 0.35355338, %v2037_v42  ;;  %v2113_v45 = vpop.f32.mrb[12].mxu1  ;;  %2129 = vmax.xlane.f32.xlu0 %v2128_v43  ;;  %v3476_v46 = vpop.f32.mrb[17].mxu0 }
 0x34e   : >> { %v2120_v47 = vmul.f32 0.35355338, %v2113_v45  ;;  %v3481_v22 = vpop.f32.mrb[13].mxu1 }
 0x34f   : >> { %v2123_v49 = vsel %vm4009_vm5, -1e+09, %v2119_v44 }
 0x350   : >> { %v2131_v50 = vsel %vm1812_vm8, %v2123_v49, -inf  ;;  %v2124_v52 = vsel %vm4009_vm5, -1e+09, %v2120_v47 }
 0x351   : >> { %2132 = vmax.xlane.f32.xlu1 %v2131_v50  ;;  %v2134_v53 = vsel %vm1812_vm8, %v2124_v52, -inf }
 0x355   : >> { %2135 = vmax.xlane.f32.xlu1 %v2134_v53 }
 0x3d6   : >> { %v2127_v55 = vpop.xlane.xlu0 %2126 }
 0x3d7   : >> { %v2137_v56 = vsub.f32 %v2121_v36, %v2127_v55 }
 0x3d9   : >> { %v2141_v57 = vmul.f32 1.442695, %v2137_v56 }
 0x3da   : >> { %v2130_v58 = vpop.xlane.xlu0 %2129 }
 0x3db   : >> { %3719 = vpow2.f32 %v2141_v57  ;;  %v2138_v59 = vsub.f32 %v2122_v41, %v2130_v58 }
 0x3dd   : >> { %v2143_v60 = vmul.f32 1.442695, %v2138_v59 }
 0x3de   : >> { %v2133_v61 = vpop.xlane.xlu1 %2132 }
 0x3df   : >> { %3721 = vpow2.f32 %v2143_v60  ;;  %v2139_v62 = vsub.f32 %v2123_v49, %v2133_v61 }
 0x3e1   : >> { %v2145_v63 = vmul.f32 1.442695, %v2139_v62 }
 0x3e2   : >> { %v2136_v0 = vpop.xlane.xlu1 %2135 }
 0x3e3   : >> { %3723 = vpow2.f32 %v2145_v63  ;;  %v2140_v1 = vsub.f32 %v2124_v52, %v2136_v0  ;;  %v3211_v52 = vld [vmem:[%s2766_s26] ss:$0 sm:$0xff] }
 0x3e4   : >> { %v2810_v0 = vld [vmem:[%s2809_s30] sm:$0xff] }
 0x3e5   : >> { %v3720_v2 = vpop.eup %3719  ;;  %v2147_v3 = vmul.f32 1.442695, %v2140_v1  ;;  %v2811_v1 = vld [vmem:[%s2809_s30 + $0x8] sm:$0xff] }
 0x3e6   : >> { %v2149_v4 = vsel %vm1812_vm8, %v3720_v2, 0.0 }
 0x3e7   : >> { %3725 = vpow2.f32 %v2147_v3  ;;  %2150 = vadd.xlane.f32.xlu0 %v2149_v4  ;;  %v2813_v3 = vld [vmem:[%s2809_s30 + $0x18] sm:$0xff] }
 0x3e9   : >> { %v3722_v5 = vpop.eup %3721 }
 0x3ea   : >> { %v2152_v6 = vsel %vm1812_vm8, %v3722_v5, 0.0 }
 0x3eb   : >> { %2153 = vadd.xlane.f32.xlu1 %v2152_v6 }
 0x3ed   : >> { %v3724_v8 = vpop.eup %3723 }
 0x3ee   : >> { %v2155_v9 = vsel %vm1812_vm8, %v3724_v8, 0.0 }
 0x3ef   : >> { %2156 = vadd.xlane.f32.xlu0 %v2155_v9 }
 0x3f1   : >> { %v3726_v10 = vpop.eup %3725 }
 0x3f2   : >> { %v2158_v11 = vsel %vm1812_vm8, %v3726_v10, 0.0 }
 0x3f3   : >> { %2159 = vadd.xlane.f32.xlu1 %v2158_v11 }
 0x474   : >> { %v2151_v12 = vpop.xlane.xlu0 %2150 }
 0x475   : >> { %3727 = vrcp.f32 %v2151_v12  ;;  %v3213_v12 = vld [vmem:[%s2778_s2] ss:$0 sm:$0xff]  ;;  %s4445_s2 = sld [smem:[#allocation18_spill]] }
 0x478   : >> { %v2154_v14 = vpop.xlane.xlu1 %2153 }
 0x479   : >> { %3729 = vrcp.f32 %v2154_v14 }
 0x47c   : >> { %v2157_v15 = vpop.xlane.xlu0 %2156 }
 0x47d   : >> { %3731 = vrcp.f32 %v2157_v15 }
 0x47f   : >> { %v3728_v16 = vpop.eup %3727 }
 0x480   : >> { %v2165_v17 = vmul.f32 %v3728_v16, %v3720_v2  ;;  %v2160_v18 = vpop.xlane.xlu1 %2159  ;;  %v2812_v2 = vld [vmem:[%s2809_s30 + $0x10] sm:$0xff]  ;;  %s2814_s30 = scalar_lea.vmem %s4404_s15, %s3819_s28 }
 0x481   : >> { %3733 = vrcp.f32 %v2160_v18  ;;  %v3628_v4 = vpack.c.bf16 %v2813_v3, %v2812_v2 }
 0x482   : >> { %3485 = vmatmul.mubr.msk.f32.vlgmr.msra.gmra.mrb[18].mxu0 %vm1812_vm8, %v2165_v17 }
 0x483   : >> { %v3730_v19 = vpop.eup %3729  ;;  %3493 = vmatpush3.msra.mxu0 %v4225_v29  ;;  %3494 = vmatprep.mubr.msk.f32.mxu0 %vm3831_vm6, %v3832_v54  ;;  %v2465_v29 = vld [vmem:[%s2462_s4 + $0x10] sm:$0xff]  ;;  %s3216_s4 = sshll.u32 %s3819_s28, 6 }
 0x484   : >> { %v2166_v21 = vmul.f32 %v3730_v19, %v3722_v5  ;;  %3502 = vmatprep.subr.mxu0 %v3832_v54  ;;  %s2905_s26 = scalar_lea.vmem %s4405_s16, %s3216_s4  ;;  %s2997_s4 = scalar_lea.vmem %s4445_s2, %s3819_s28 }
 0x485   : >> { %v2906_v17 = vld [vmem:[%s2905_s26] sm:$0xff]  ;;  %v2907_v18 = vld [vmem:[%s2905_s26 + $0x8] sm:$0xff] }
 0x486   : >> { %3490 = vmatmul.mubr.msk.f32.vlgmr.msra.gmra.mrb[14].mxu1 %vm1812_vm8, %v2166_v21  ;;  %v3631_v19 = vpack.c.bf16 %v2907_v18, %v2906_v17  ;;  %v2908_v21 = vld [vmem:[%s2905_s26 + $0x10] sm:$0xff] }
 0x487   : >> { %v3732_v23 = vpop.eup %3731  ;;  %3498 = vmatpush3.msra.mxu1 %v4228_v31  ;;  %3499 = vmatprep.mubr.msk.f32.mxu1 %vm3831_vm6, %v3832_v54 }
 0x488   : >> { %v2167_v24 = vmul.f32 %v3732_v23, %v3724_v8  ;;  %3507 = vmatprep.subr.mxu1 %v3832_v54  ;;  %v2909_v23 = vld [vmem:[%s2905_s26 + $0x18] sm:$0xff] }
 0x48a   : >> { %3495 = vmatmul.mubr.msk.f32.vlgmr.msra.gmra.mrb[20].mxu0 %vm1812_vm8, %v2167_v24  ;;  %v3634_v24 = vpack.c.bf16 %v2909_v23, %v2908_v21 }
 0x48b   : >> { %v3734_v25 = vpop.eup %3733  ;;  %3504 = vmatprep.mubr.msk.f32.mxu0 %vm3831_vm6, %v3832_v54  ;;  %3503 = vmatpush3.msra.mxu0 %v2463_v27 }
 0x48c   : >> { %v2168_v26 = vmul.f32 %v3734_v25, %v3726_v10  ;;  %3512 = vmatprep.subr.mxu0 %v3832_v54  ;;  %v3212_v10 = vld [vmem:[%s2776_s19] ss:$0 sm:$0xff]  ;;  %s2914_s19 = scalar_lea.vmem %s4406_s17, %s3819_s28 }
 0x48d   : >> { %v2910_v25 = vld [vmem:[%s2905_s26 + $0x20] sm:$0xff] }
 0x48e   : >> { %3500 = vmatmul.mubr.msk.f32.vlgmr.msra.gmra.mrb[16].mxu1 %vm1812_vm8, %v2168_v26  ;;  %v2911_v26 = vld [vmem:[%s2905_s26 + $0x28] sm:$0xff] }
 0x48f   : >> { %3509 = vmatprep.mubr.msk.f32.mxu1 %vm3831_vm6, %v3832_v54  ;;  %3508 = vmatpush3.msra.mxu1 %v2464_v28  ;;  %v3637_v27 = vpack.c.bf16 %v2911_v26, %v2910_v25  ;;  %v2912_v28 = vld [vmem:[%s2905_s26 + $0x30] sm:$0xff] }
 0x490   : >> { %3517 = vmatprep.subr.mxu1 %v3832_v54 }
 0x555   : >> { %v2238_v30 = vpop.f32.mrb[18].mxu0 }
 0x556   : >> { %v3486_v31 = vpop.f32.mrb[19].mxu0  ;;  %3505 = vmatmul.mubr.msk.f32.vlgmr.msra.gmra.mrb[22].mxu0 %vm1812_vm8, %v2238_v30 }
 0x557   : >> { %3513 = vmatpush3.msra.mxu0 %v2465_v29  ;;  %3514 = vmatprep.mubr.msk.f32.mxu0 %vm3831_vm6, %v3832_v54  ;;  %v2913_v29 = vld [vmem:[%s2905_s26 + $0x38] sm:$0xff]  ;;  %v3214_v31 = vld [vmem:[%s2814_s30] ss:$0 sm:$0xff]  ;;  %s4446_s26 = sld [smem:[#allocation19_spill]] }
 0x558   : >> { %3624 = vmatprep.subr.bf16.mxu0 %v3830_v20  ;;  %v3640_v30 = vpack.c.bf16 %v2913_v29, %v2912_v28 }
 0x559   : >> { %v2311_v33 = vpop.f32.mrb[14].mxu1 }
 0x55a   : >> { %v3491_v34 = vpop.f32.mrb[15].mxu1  ;;  %3510 = vmatmul.mubr.msk.f32.vlgmr.msra.gmra.mrb[18].mxu1 %vm1812_vm8, %v2311_v33 }
 0x55b   : >> { %3518 = vmatpush3.msra.mxu1 %v2466_v32  ;;  %3519 = vmatprep.mubr.msk.f32.mxu1 %vm3831_vm6, %v3832_v54 }
 0x55c   : >> { %3630 = vmatprep.subr.bf16.mxu1 %v3830_v20 }
 0x55d   : >> { %v2384_v35 = vpop.f32.mrb[20].mxu0  ;;  %s2999_s27 = scalar_lea.vmem %s4446_s26, %s3819_s28  ;;  %s913_s28 = sadd.s32 1, %s3819_s28  }
 0x55e   : >> { %v3496_v36 = vpop.f32.mrb[21].mxu0  ;;  %3515 = vmatmul.mubr.msk.f32.vlgmr.msra.gmra.mrb[24].mxu0 %vm1812_vm8, %v2384_v35  ;;  %p910_p11 = scmp.ge.s32.totalorder %s913_s28, 2  }
 0x55f   : >> { %3530 = vmatprep.mubr.msk.f32.mxu0 %vm3831_vm6, %v3832_v54  ;;  %s4448_s0 = sld [smem:[#allocation8_spill]] (%p910_p11)  ;;  %s4450_s23 = sld [smem:[#allocation20_spill]] (%p910_p11) }
 0x560   : > { %s3032_s28 = scalar_lea.sflag (%p910_p11), [#allocation3], %s655_s20  ;;  %s3833_s25 = smov (%p910_p11), [#allocation2]  }
 0x561   : >> { %v2457_v37 = vpop.f32.mrb[16].mxu1  ;;  %s3745_s26 = sshll.u32 (%p910_p11), %s3833_s25, 4  ;;  %s3746_s26 = int_to_ptr.vmem [resolvable:$false] %s3745_s26 }
 0x562   : >> { %v3501_v38 = vpop.f32.mrb[17].mxu1  ;;  %3520 = vmatmul.mubr.msk.f32.vlgmr.msra.gmra.mrb[20].mxu1 %vm1812_vm8, %v2457_v37 }
 0x563   : >> { %3549 = vmatprep.mubr.msk.f32.mxu1 %vm3831_vm6, %v3832_v54  ;;  %3632 = vmatpush3.bf16.msra.mxu1 %v3631_v19 }
 0x564   : >> { %3633 = vmatprep.subr.bf16.mxu1 %v3830_v20 }
 0x565   : > { %s3222_s21 = sshll.u32 (%p910_p11), %s4448_s0, 7  ;;  %s4451_s2 = smov (%p910_p11), %s4450_s23 }
 0x566   : > { %s4349_s24 = scalar_lea.hbm (%p910_p11), %s4450_s23, %s3222_s21 }
 0x567   : >> { %3635 = vmatpush3.bf16.msra.mxu1 %v3634_v24 }
 0x568   : >> { %3636 = vmatprep.subr.bf16.mxu1 %v3830_v20 }
 0x56b   : >> { %3638 = vmatpush3.bf16.msra.mxu1 %v3637_v27 }
 0x56c   : >> { %3639 = vmatprep.subr.bf16.mxu1 %v3830_v20 }
 0x56f   : >> { %3641 = vmatpush3.bf16.msra.mxu1 %v3640_v30 }
 0x629   : >> { %v2536_v39 = vpop.f32.mrb[22].mxu0 }
 0x62a   : >> { %v3506_v40 = vpop.f32.mrb[23].mxu0  ;;  %v2759_v42 = vsel %vm934_vm7, %v2536_v39, 0.0 }
 0x62d   : >> { %v2609_v41 = vpop.f32.mrb[18].mxu1 }
 0x62e   : >> { %v2760_v43 = vsel %vm934_vm7, %v2609_v41, 0.0  ;;  %v3511_v44 = vpop.f32.mrb[19].mxu1 }
 0x62f   : >> { %v2761_v45 = vadd.f32 %v2760_v43, %v2759_v42  ;;  %v3217_v43 = vld [vmem:[%s2914_s19] ss:$0 sm:$0xff] }
 0x631   : >> { %v2682_v46 = vpop.f32.mrb[24].mxu0 }
 0x632   : >> { %v2762_v47 = vsel %vm934_vm7, %v2682_v46, 0.0  ;;  %v3516_v22 = vpop.f32.mrb[25].mxu0 }
 0x633   : >> { %v2763_v49 = vadd.f32 %v2762_v47, %v2761_v45 }
 0x635   : >> { %v2755_v54 = vpop.f32.mrb[20].mxu1 }
 0x636   : >> { %v2764_v50 = vsel %vm934_vm7, %v2755_v54, 0.0  ;;  %v3521_v53 = vpop.f32.mrb[21].mxu1 }
 0x637   : >> { %v2765_v55 = vadd.f32 %v2764_v50, %v2763_v49 }
 0x639   : >> { %v2774_v56 = vadd.f32 %v3211_v52, %v2765_v55 }
 0x63b   : >> { %v2775_v57 = vadd.f32 %v2774_v56, %v4084_v7  ;;  %v3625_v7 = vpack.c.bf16 %v2811_v1, %v2810_v0 }
 0x63d   : >> { %v2780_v58 = vsel %vm934_vm7, %v2775_v57, 0.0  ;;  %3626 = vmatpush3.bf16.msra.mxu0 %v3625_v7 }
 0x63e   : >> { %2781 = vadd.xlane.f32.xlu0 %v2780_v58  ;;  %3627 = vmatprep.subr.bf16.mxu0 %v3830_v20 }
 0x641   : >> { %3629 = vmatpush3.bf16.msra.mxu0 %v3628_v4 }
 0x6cb   : >> { %v2782_v59 = vpop.xlane.xlu0 %2781 }
 0x6cc   : >> { %v2784_v60 = vmul.f32 0.03125, %v2782_v59  ;;  %v3219_v59 = vld [vmem:[%s2997_s4] ss:$0 sm:$0xff]  ;;  %s3045_s4 = sshll.u32 (%p910_p11), %s657_s3, 4  ;;  %s3046_s4 = int_to_ptr.vmem [resolvable:$true] %s3045_s4 }
 0x6cd   : > { %s3741_s29 = scalar_lea.vmem (%p910_p11), %s3046_s4, 128  ;;  %p3748_p1 = scmp.lt.s32.totalorder (%p910_p11), %s3046_s4, %s3746_s26 }
 0x6ce   : >> { %v2785_v61 = vsub.f32 %v2775_v57, %v2784_v60  ;;  %p3742_p12 = scmp.ne.s32.totalorder (%p910_p11), %s3046_s4, %s3741_s29 }
 0x6d0   : >> { %v2786_v62 = vmul.f32 %v2785_v61, %v2785_v61  ;;  %p3743_p13 = pnand (%p910_p11), %p3742_p12, %p3977_p5 }
 0x6d2   : >> { %v2787_v63 = vsel %vm934_vm7, %v2786_v62, 0.0  ;;  %p3744_p0 = pneg (%p910_p11), %p3743_p13 }
 0x6d3   : >> { %2788 = vadd.xlane.f32.xlu1 %v2787_v63 }
 0x760   : >> { %v2789_v5 = vpop.xlane.xlu1 %2788 }
 0x761   : >> { %v2790_v6 = vmul.f32 0.03125, %v2789_v5 }
 0x763   : >> { %v2791_v8 = vadd.f32 1e-06, %v2790_v6 }
 0x765   : >> { %3735 = vrsqrt.f32 %v2791_v8 }
 0x76f   : >> { %v3736_v9 = vpop.eup %3735 }
 0x770   : >> { %v2793_v11 = vmul.f32 %v3736_v9, %v2785_v61  ;;  %v3220_v61 = vld [vmem:[%s2999_s27] ss:$0 sm:$0xff]  ;;  %s3747_s27 = scalar_lea.vmem (%p910_p11), %s3746_s26, 256 }
 0x771   : > { %p3749_p2 = scmp.lt.s32.totalorder (%p910_p11), %s3747_s27, %s3741_s29 }
 0x772   : >> { %v2800_v14 = vmul.f32 %v3212_v10, %v2793_v11 }
 0x773   : > { %p3750_p3 = por (%p910_p11), %p3749_p2, %p3748_p1 }
 0x774   : >> { %v2807_v15 = vadd.f32 %v3213_v12, %v2800_v14 }
 0x775   : > { %p3751_p4 = pnand (%p910_p11), %p3750_p3, %p3744_p0 }
 0x776   : >> { %v2808_v16 = vmul.f32 %v2807_v15, %v4039_v48 }
 0x778   : >> { %3531 = vmatmul.mubr.msk.f32.vlgmr.msra.gmra.mrb[26].mxu0 %vm934_vm7, %v2808_v16 }
 0x84b   : >> { %v2891_v32 = vpop.f32.mrb[26].mxu0 }
 0x84c   : >> { %v2892_v33 = vadd.f32 %v3214_v31, %v2891_v32  ;;  %v3532_v34 = vpop.f32.mrb[27].mxu0 }
 0x84e   : >> { %v2896_v35 = vmul.f32 0.044715, %v2892_v33  ;;  %v2895_v41 = vmul.f32 0.5, %v2892_v33 }
 0x850   : >> { %v2897_v36 = vmul.f32 %v2896_v35, %v2892_v33 }
 0x852   : >> { %v2898_v37 = vmul.f32 %v2897_v36, %v2892_v33 }
 0x854   : >> { %v2899_v38 = vadd.f32 %v2898_v37, %v2892_v33 }
 0x856   : >> { %v2900_v39 = vmul.f32 0.7978846, %v2899_v38 }
 0x858   : >> { %3737 = vtanh.f32 %v2900_v39 }
 0x862   : >> { %v3738_v40 = vpop.eup %3737 }
 0x863   : >> { %v2902_v42 = vadd.f32 1.0, %v3738_v40 }
 0x865   : >> { %v2903_v20 = vmul.f32 %v2902_v42, %v2895_v41 }
 0x867   : >> { %3550 = vmatmul.mubr.msk.f32.vlgmr.msra.gmra.mrb[22].mxu1 %vm2922_vm9, %v2903_v20 }
 0x93a   : >> { %v2992_v44 = vpop.f32.mrb[22].mxu1 }
 0x93b   : >> { %v2993_v45 = vadd.f32 %v3217_v43, %v2992_v44  ;;  %v3551_v46 = vpop.f32.mrb[23].mxu1 }
 0x93d   : >> { %v2996_v47 = vadd.f32 %v2993_v45, %v2808_v16 }
 0x93f   : >> { %v3001_v22 = vsel %vm934_vm7, %v2996_v47, 0.0 }
 0x940   : >> { %3002 = vadd.xlane.f32.xlu0 %v3001_v22 }
 0x9cd   : >> { %v3003_v49 = vpop.xlane.xlu0 %3002 }
 0x9ce   : >> { %v3004_v54 = vmul.f32 0.03125, %v3003_v49 }
 0x9d0   : >> { %v3005_v50 = vsub.f32 %v2996_v47, %v3004_v54 }
 0x9d2   : >> { %v3006_v52 = vmul.f32 %v3005_v50, %v3005_v50 }
 0x9d4   : >> { %v3007_v53 = vsel %vm934_vm7, %v3006_v52, 0.0 }
 0x9d5   : >> { %3008 = vadd.xlane.f32.xlu1 %v3007_v53 }
 0xa62   : >> { %v3009_v55 = vpop.xlane.xlu1 %3008 }
 0xa63   : >> { %v3010_v56 = vmul.f32 0.03125, %v3009_v55 }
 0xa65   : >> { %v3011_v57 = vadd.f32 1e-06, %v3010_v56 }
 0xa67   : >> { %3739 = vrsqrt.f32 %v3011_v57 }
 0xa71   : >> { %v3740_v58 = vpop.eup %3739 }
 0xa72   : >> { %v3013_v60 = vmul.f32 %v3740_v58, %v3005_v50 }
 0xa74   : >> { %v3020_v62 = vmul.f32 %v3219_v59, %v3013_v60  ;;  %912 = sbr.rel (!%p910_p11) target bundleno = 382 (0x17e), region = 164 }
 0xa76   : >> { %v3027_v63 = vadd.f32 %v3220_v61, %v3020_v62 }
 0xa78   : >> { %v3028_v0 = vmul.f32 %v3027_v63, %v4039_v48  }
 0xa7a   : >> { %v4447_v52 = vmov %v3028_v0  ;;  %3030 = vst.msk [vmem:[%s657_s3] sm:$0xff] (%p910_p11), %vm934_vm7, %v3028_v0 }
 0xa7b   : > { %3754 = shalt.err (!%p3751_p4)
}
 0xa7c   : > { %s3755_s20 = scalar_lea.hbm %s4349_s24, 128  ;;  %s3759_s0 = scalar_lea.hbm %s4451_s2, 256 }
 0xa7d   : > { %p3756_p7 = scmp.ne.s32.totalorder %s4349_s24, %s3755_s20  ;;  %p3760_p10 = scmp.lt.u32.totalorder %s4349_s24, %s4451_s2 }
 0xa7e   : > { %p3761_p11 = scmp.lt.u32.totalorder %s3759_s0, %s3755_s20  ;;  %p3763_p13 = scmp.lt.u32.totalorder %s3755_s20, %s4349_s24 }
 0xa7f   : > { %p3757_p8 = pnand %p3756_p7, %p3977_p5 }
 0xa80   : > { %p3762_p12 = por %p3761_p11, %p3760_p10 }
 0xa81   : > { %p3758_p9 = pneg %p3757_p8 }
 0xa82   : > { %p3764_p0 = por %p3763_p13, %p3762_p12 }
 0xa84   : > { %p3765_p1 = pnand %p3764_p0, %p3758_p9 }
 0xa86   : > { %3768 = shalt.err (!%p3765_p1)
}
 0xa87   : > { %3646 = dma.vmem_to_hbm [thread:$0]  (%p3977_p5), %s3046_s4, 128, %s4349_s24, %s3032_s28  }
 0xa88 PF: > { %s4452_s19 = sld [smem:[#allocation7_spill]]  ;;  %s4453_s23 = sld [smem:[#allocation5_spill]] }
 0xa8e   : > { %p3652_p2 = scmp.ge.s32.totalorder %s4452_s19, 2  ;;  %s3057_s25 = sand.u32 1, %s4453_s23  }
 0xa8f   : > { %s3058_s26 = scalar_lea.sflag [#allocation3], %s3057_s25 }
 0xa90   : > { %p3649_p3 = pnand %p3652_p2, %p3981_p6 }
 0xa92   : > { %3794 = dma.done.wait (!%p3649_p3), %s3058_s26, 128  }
 0xa93   : > { %3796 = vsyncadd (!%p3649_p3), %s3058_s26, 4294967168  ;;  %s4455_s24 = sld [smem:[#allocation9_spill]]  ;;  %s4456_s27 = sld [smem:[#allocation6_spill]] }
 0xa94   : > { %s4457_s23 = sld [smem:[#allocation10_spill]]  ;;  %s4458_s1 = smov %s3803_s22 }
 0xa99   : > { %p30_p4 = scmp.ge.s32.totalorder %s4455_s24, 4   ;;  %s4459_s22 = smov %s4456_s27 }
 0xa9b   :  { %32 = sbr.rel (!%p30_p4) target bundleno = 12 (0xc), region = 175 }
 0xaa2   :  { %3063 = vsyncpa [#allocation3], 1 }
 0xaa3   :  { %3065 = vsyncpa [#allocation3 + $0x1], 1 }

</bundles_post_ra>
